<compile_context>
chip_gen: v6e
topology: v6e:2x2x1
jax: 0.10.0
libtpu: 0.0.40
codegen_flags: <defaults>
</compile_context>

<pallas_src>
import functools

import jax
import jax.numpy as jnp
from jax.experimental import pallas as pl
from jax.experimental.pallas import tpu as pltpu


# -----------------------------------------------------------------------------
# Kernel: grid = (batch, layer).  One grid step = one residual attention block
# applied to one batch element's full (L, E) sequence, entirely in VMEM.
# The output block index depends only on the batch axis, so the residual
# stream stays resident in VMEM across the layer axis (carry pattern); the
# layer-indexed weight blocks are double-buffered by the pipeline, hiding the
# next layer's weight DMA behind the current layer's compute.
# -----------------------------------------------------------------------------
def _transformer_kernel(*refs, n_head, has_mask):
    o_ref = refs[-1]
    if has_mask:
        x_ref, mask_ref = refs[0], refs[1]
        w_refs = refs[2:-1]
    else:
        x_ref, mask_ref = refs[0], None
        w_refs = refs[1:-1]
    (in_w_ref, in_b_ref, out_w_ref, out_b_ref,
     ln1_w_ref, ln1_b_ref, ln2_w_ref, ln2_b_ref,
     fc_w_ref, fc_b_ref, proj_w_ref, proj_b_ref) = w_refs

    layer = pl.program_id(1)

    # Fresh batch element: seed the resident residual stream from the input.
    @pl.when(layer == 0)
    def _():
        o_ref[...] = x_ref[...]

    # Matmul compute dtype is driven by the (host-prepared) weight dtype:
    # bf16 = fast MXU path, f32 = exact path (used for verification).
    cd = in_w_ref.dtype
    exact = jnp.dtype(cd) == jnp.dtype(jnp.float32)

    x = o_ref[0].astype(jnp.float32)          # (L, E) carried residual stream
    L, E = x.shape
    Dh = E // n_head
    eps = 1e-5                                # nn.LayerNorm default

    def layernorm(v, w_ref, b_ref):
        mu = jnp.mean(v, axis=-1, keepdims=True)
        var = jnp.mean((v - mu) ** 2, axis=-1, keepdims=True)
        return (v - mu) * jax.lax.rsqrt(var + eps) * w_ref[0] + b_ref[0]

    # ---- x = x + attn(ln_1(x)) ----------------------------------------------
    # 1/sqrt(Dh) is already folded into the Q columns of in_w / in_b (host).
    h = layernorm(x, ln1_w_ref, ln1_b_ref)
    qkv = jnp.dot(h.astype(cd), in_w_ref[0],
                  preferred_element_type=jnp.float32) + in_b_ref[0]   # (L, 3E)

    q = jnp.swapaxes(qkv[:, :E].reshape(L, n_head, Dh), 0, 1)         # (H, L, Dh)
    k = jnp.swapaxes(qkv[:, E:2 * E].reshape(L, n_head, Dh), 0, 1)
    v = jnp.swapaxes(qkv[:, 2 * E:].reshape(L, n_head, Dh), 0, 1)

    # One batched matmul over all heads (head axis = batch dim).
    s = jnp.einsum("hqd,hkd->hqk", q.astype(cd), k.astype(cd),
                   preferred_element_type=jnp.float32)                # (H, L, L)
    if has_mask:
        s = s + mask_ref[...].astype(jnp.float32)[None, :, :]
    s = s - jnp.max(s, axis=-1, keepdims=True)
    p = jnp.exp(s)
    denom = jnp.sum(p, axis=-1, keepdims=True)
    p = p * pl.reciprocal(denom, approx=not exact)                    # EUP on fast path
    ctx = jnp.einsum("hqk,hkd->hqd", p.astype(cd), v.astype(cd),
                     preferred_element_type=jnp.float32)              # (H, L, Dh)

    attn = jnp.swapaxes(ctx, 0, 1).reshape(L, E)
    attn = jnp.dot(attn.astype(cd), out_w_ref[0],
                   preferred_element_type=jnp.float32) + out_b_ref[0]
    x = x + attn

    # ---- x = x + mlp(ln_2(x)) --------------------------------------------------
    h2 = layernorm(x, ln2_w_ref, ln2_b_ref)
    ff = jnp.dot(h2.astype(cd), fc_w_ref[0],
                 preferred_element_type=jnp.float32) + fc_b_ref[0]    # (L, 4E)
    ff = ff * jax.nn.sigmoid(1.702 * ff)                              # QuickGELU (f32)
    ff = jnp.dot(ff.astype(cd), proj_w_ref[0],
                 preferred_element_type=jnp.float32) + proj_b_ref[0]
    x = x + ff

    o_ref[0] = x.astype(o_ref.dtype)


# -----------------------------------------------------------------------------
# Wrapper: the whole Transformer as ONE pallas_call.
# -----------------------------------------------------------------------------
_WEIGHT_ORDER = ["in_w", "in_b", "out_w", "out_b",
                 "ln1_w", "ln1_b", "ln2_w", "ln2_b",
                 "fc_w", "fc_b", "proj_w", "proj_b"]


def _weight_spec(w):
    # Stacked weight (layers, ...): stream one layer's slab per grid step.
    return pl.BlockSpec((1,) + w.shape[1:], lambda n, l: (l, 0, 0))


def transformer_forward(x_lne, stacked_params, n_head, attn_mask=None):
    """x_lne: (L, N, E) as in the PyTorch module. Returns (L, N, E)."""
    L, N, E = x_lne.shape
    num_layers = stacked_params["in_w"].shape[0]
    mask = None if attn_mask is None else attn_mask.astype(jnp.float32)
    has_mask = mask is not None

    x = jnp.transpose(x_lne, (1, 0, 2))        # (N, L, E), done once

    weights = [stacked_params[k] for k in _WEIGHT_ORDER]
    operands = ([x, mask] if has_mask else [x]) + weights

    kernel = functools.partial(_transformer_kernel, n_head=n_head,
                               has_mask=has_mask)

    # Explicit scoped-VMEM budget (v5e default is only 16 MiB).
    nbytes = lambda a: a.size * a.dtype.itemsize
    weight_bytes_per_layer = sum(nbytes(w) for w in weights) // num_layers
    mask_bytes = nbytes(mask) if has_mask else 0
    block_bytes = L * E * x.dtype.itemsize
    act_bytes = 4 * L * (3 * E + 4 * E + 2 * E) + 4 * n_head * L * L
    est = (4 * block_bytes + 2 * weight_bytes_per_layer + 2 * mask_bytes
           + 2 * act_bytes)
    vmem_limit = int(min(max(2 * est, 32 * 2 ** 20), 64 * 2 ** 20))

    in_specs = [pl.BlockSpec((1, L, E), lambda n, l: (n, 0, 0))]
    if has_mask:
        in_specs.append(pl.BlockSpec(mask.shape, lambda n, l: (0, 0)))
    in_specs += [_weight_spec(w) for w in weights]

    out = pl.pallas_call(
        kernel,
        out_shape=jax.ShapeDtypeStruct((N, L, E), x.dtype),
        grid_spec=pltpu.PrefetchScalarGridSpec(
            num_scalar_prefetch=0,
            grid=(N, num_layers),
            in_specs=in_specs,
            # Constant block index along the layer axis -> residual stream is
            # resident in VMEM across layers; written back when batch changes.
            out_specs=pl.BlockSpec((1, L, E), lambda n, l: (n, 0, 0)),
        ),
        compiler_params=pltpu.CompilerParams(
            dimension_semantics=("parallel", "arbitrary"),
            vmem_limit_bytes=vmem_limit),
    )(*operands)
    return jnp.transpose(out, (1, 0, 2))       # back to (L, N, E)


# -----------------------------------------------------------------------------
# Parameters: raw (PyTorch layout) + host-side preparation for the kernel.
# -----------------------------------------------------------------------------
def init_layer_params(key, width):
    """Raw parameters with PyTorch layouts/shapes."""
    ks = jax.random.split(key, 8)
    s = 0.02
    E = width
    return {
        "in_w":   s * jax.random.normal(ks[0], (3 * E, E), jnp.float32),
        "in_b":   s * jax.random.normal(ks[1], (3 * E,), jnp.float32),
        "out_w":  s * jax.random.normal(ks[2], (E, E), jnp.float32),
        "out_b":  s * jax.random.normal(ks[3], (E,), jnp.float32),
        "ln1_w":  jnp.ones((E,), jnp.float32),
        "ln1_b":  jnp.zeros((E,), jnp.float32),
        "ln2_w":  jnp.ones((E,), jnp.float32),
        "ln2_b":  jnp.zeros((E,), jnp.float32),
        "fc_w":   s * jax.random.normal(ks[4], (4 * E, E), jnp.float32),
        "fc_b":   s * jax.random.normal(ks[5], (4 * E,), jnp.float32),
        "proj_w": s * jax.random.normal(ks[6], (E, 4 * E), jnp.float32),
        "proj_b": s * jax.random.normal(ks[7], (E,), jnp.float32),
    }


def _prepare_layer_params(p, n_head, compute_dtype):
    """Host-side: transpose weights to RHS-major, fold 1/sqrt(Dh) into the Q
    projection, cast weight matrices to the MXU compute dtype."""
    E = p["out_w"].shape[0]
    Dh = E // n_head
    scale = 1.0 / (Dh ** 0.5)
    qkv_scale = jnp.concatenate(
        [jnp.full((E,), scale, jnp.float32), jnp.ones((2 * E,), jnp.float32)])
    wd = compute_dtype
    return {
        "in_w":   (p["in_w"].T * qkv_scale[None, :]).astype(wd),   # (E, 3E)
        "in_b":   (p["in_b"] * qkv_scale)[None, :].astype(jnp.float32),
        "out_w":  p["out_w"].T.astype(wd),                         # (E, E)
        "out_b":  p["out_b"][None, :].astype(jnp.float32),
        "ln1_w":  p["ln1_w"][None, :].astype(jnp.float32),
        "ln1_b":  p["ln1_b"][None, :].astype(jnp.float32),
        "ln2_w":  p["ln2_w"][None, :].astype(jnp.float32),
        "ln2_b":  p["ln2_b"][None, :].astype(jnp.float32),
        "fc_w":   p["fc_w"].T.astype(wd),                          # (E, 4E)
        "fc_b":   p["fc_b"][None, :].astype(jnp.float32),
        "proj_w": p["proj_w"].T.astype(wd),                        # (4E, E)
        "proj_b": p["proj_b"][None, :].astype(jnp.float32),
    }


def prepare_stacked_params(raw_layer_params, n_head, compute_dtype=jnp.bfloat16):
    """Prepare every layer and stack along a leading `layers` axis so the
    fused kernel can stream one layer's weights per grid step."""
    prepped = [_prepare_layer_params(p, n_head, compute_dtype)
               for p in raw_layer_params]
    return {k: jnp.stack([lp[k] for lp in prepped], axis=0) for k in _WEIGHT_ORDER}


# -----------------------------------------------------------------------------
# Pure-JAX reference (PyTorch semantics, raw-layout params).
# -----------------------------------------------------------------------------
def _ref_block(x_lne, mask, p, n_head):
    L, N, E = x_lne.shape
    Dh = E // n_head
    eps = 1e-5

    def ln(v, w, b):
        mu = jnp.mean(v, -1, keepdims=True)
        var = jnp.mean((v - mu) ** 2, -1, keepdims=True)
        return (v - mu) / jnp.sqrt(var + eps) * w + b

    h = ln(x_lne, p["ln1_w"], p["ln1_b"])
    qkv = jnp.einsum("lne,fe->lnf", h, p["in_w"]) + p["in_b"]
    q, k, v = qkv[..., :E], qkv[..., E:2 * E], qkv[..., 2 * E:]
    q = q.reshape(L, N, n_head, Dh) / jnp.sqrt(Dh)
    k = k.reshape(L, N, n_head, Dh)
    v = v.reshape(L, N, n_head, Dh)
    s = jnp.einsum("qnhd,knhd->nhqk", q, k)
    if mask is not None:
        s = s + mask
    pattn = jax.nn.softmax(s, axis=-1)
    o = jnp.einsum("nhqk,knhd->qnhd", pattn, v).reshape(L, N, E)
    o = jnp.einsum("lne,fe->lnf", o, p["out_w"]) + p["out_b"]
    x = x_lne + o

    h2 = ln(x, p["ln2_w"], p["ln2_b"])
    ff = jnp.einsum("lne,fe->lnf", h2, p["fc_w"]) + p["fc_b"]
    ff = ff * jax.nn.sigmoid(1.702 * ff)
    ff = jnp.einsum("lnf,ef->lne", ff, p["proj_w"]) + p["proj_b"]
    return x + ff


def transformer_reference(x_lne, raw_layer_params, n_head, attn_mask=None):
    mask = None if attn_mask is None else attn_mask.astype(jnp.float32)
    x = x_lne
    for p in raw_layer_params:
        x = _ref_block(x, mask, p, n_head)
    return x


# -----------------------------------------------------------------------------
if __name__ == "__main__":
    # Transformer(width=128, layers=2, heads=4), seq=8, batch=2
    # (width=128 keeps every block (8,128)-lane aligned).
    width, layers, heads = 128, 2, 4
    seq_len, batch = 8, 2

    key = jax.random.PRNGKey(0)
    k_x, k_p = jax.random.split(key)
    x = jax.random.normal(k_x, (seq_len, batch, width), jnp.float32)  # (L, N, E)

    layer_keys = jax.random.split(k_p, layers)
    raw_params = [init_layer_params(lk, width) for lk in layer_keys]

    # ---- optimized bf16 MXU path, no attention mask --------------------------
    stacked_bf16 = prepare_stacked_params(raw_params, heads, jnp.bfloat16)
    out = transformer_forward(x, stacked_bf16, heads, attn_mask=None)
    out = jax.block_until_ready(out)
    ref = transformer_reference(x, raw_params, heads, attn_mask=None)
    assert out.shape == (seq_len, batch, width)
    assert jnp.allclose(out, ref, atol=2e-2, rtol=2e-2), "bf16 path mismatch"

    # ---- exact f32 path with a causal additive mask ---------------------------
    causal = jnp.where(
        jnp.arange(seq_len)[None, :] > jnp.arange(seq_len)[:, None],
        -1e9, 0.0).astype(jnp.float32)
    stacked_f32 = prepare_stacked_params(raw_params, heads, jnp.float32)
    out32 = transformer_forward(x, stacked_f32, heads, attn_mask=causal)
    out32 = jax.block_until_ready(out32)
    ref32 = transformer_reference(x, raw_params, heads, attn_mask=causal)
    assert jnp.allclose(out32, ref32, atol=1e-4, rtol=1e-4), "f32 path mismatch"

    print("KERNEL_OK")
</pallas_src>

<mosaic_0001>
module attributes {stable_mosaic.version = 11 : i64} {
  func.func @_transformer_kernel(%arg0: i32, %arg1: i32, %arg2: memref<1x8x128xf32, #tpu.memory_space<vmem>>, %arg3: memref<1x128x384xbf16, #tpu.memory_space<vmem>>, %arg4: memref<1x1x384xf32, #tpu.memory_space<vmem>>, %arg5: memref<1x128x128xbf16, #tpu.memory_space<vmem>>, %arg6: memref<1x1x128xf32, #tpu.memory_space<vmem>>, %arg7: memref<1x1x128xf32, #tpu.memory_space<vmem>>, %arg8: memref<1x1x128xf32, #tpu.memory_space<vmem>>, %arg9: memref<1x1x128xf32, #tpu.memory_space<vmem>>, %arg10: memref<1x1x128xf32, #tpu.memory_space<vmem>>, %arg11: memref<1x128x512xbf16, #tpu.memory_space<vmem>>, %arg12: memref<1x1x512xf32, #tpu.memory_space<vmem>>, %arg13: memref<1x512x128xbf16, #tpu.memory_space<vmem>>, %arg14: memref<1x1x128xf32, #tpu.memory_space<vmem>>, %arg15: memref<1x8x128xf32, #tpu.memory_space<vmem>>) attributes {dimension_semantics = [#tpu.dimension_semantics<parallel>, #tpu.dimension_semantics<arbitrary>], iteration_bounds = array<i64: 2, 2>, scalar_prefetch = 0 : i64, scratch_operands = 0 : i64, tpu.core_type = #tpu.core_type<tc>, window_params = [{transform_indices = @transform_0, window_bounds = array<i64: 1, 8, 128>}, {transform_indices = @transform_1, window_bounds = array<i64: 1, 128, 384>}, {transform_indices = @transform_2, window_bounds = array<i64: 1, 1, 384>}, {transform_indices = @transform_3, window_bounds = array<i64: 1, 128, 128>}, {transform_indices = @transform_4, window_bounds = array<i64: 1, 1, 128>}, {transform_indices = @transform_5, window_bounds = array<i64: 1, 1, 128>}, {transform_indices = @transform_6, window_bounds = array<i64: 1, 1, 128>}, {transform_indices = @transform_7, window_bounds = array<i64: 1, 1, 128>}, {transform_indices = @transform_8, window_bounds = array<i64: 1, 1, 128>}, {transform_indices = @transform_9, window_bounds = array<i64: 1, 128, 512>}, {transform_indices = @transform_10, window_bounds = array<i64: 1, 1, 512>}, {transform_indices = @transform_11, window_bounds = array<i64: 1, 512, 128>}, {transform_indices = @transform_12, window_bounds = array<i64: 1, 1, 128>}, {transform_indices = @transform_13, window_bounds = array<i64: 1, 8, 128>}]} {
    %c0_i32 = arith.constant 0 : i32
    %0 = arith.cmpi eq, %arg1, %c0_i32 : i32
    %1 = arith.extui %0 : i1 to i32
    %c0_i32_0 = arith.constant 0 : i32
    %2 = arith.cmpi ne, %1, %c0_i32_0 : i32
    scf.if %2 {
      %c0_61 = arith.constant 0 : index
      %c0_62 = arith.constant 0 : index
      %c0_63 = arith.constant 0 : index
      %129 = vector.load %arg2[%c0_61, %c0_62, %c0_63] : memref<1x8x128xf32, #tpu.memory_space<vmem>>, vector<1x8x128xf32>
      %c0_64 = arith.constant 0 : index
      %c0_65 = arith.constant 0 : index
      %c0_66 = arith.constant 0 : index
      %130 = vector.load %arg15[%c0_64, %c0_65, %c0_66] : memref<1x8x128xf32, #tpu.memory_space<vmem>>, vector<1x8x128xf32>
      tpu.vector_store %arg15[%c0_64, %c0_65, %c0_66], %129 {strides = array<i32>} : memref<1x8x128xf32, #tpu.memory_space<vmem>>, vector<1x8x128xf32>,
    } else {
    }
    %c0 = arith.constant 0 : index
    %c0_1 = arith.constant 0 : index
    %c0_2 = arith.constant 0 : index
    %3 = vector.load %arg15[%c0, %c0_1, %c0_2] : memref<1x8x128xf32, #tpu.memory_space<vmem>>, vector<1x8x128xf32>
    %4 = vector.shape_cast %3 : vector<1x8x128xf32> to vector<8x128xf32>
    %cst = arith.constant dense<0.000000e+00> : vector<8xf32>
    %5 = vector.multi_reduction <add>, %4, %cst [1] : vector<8x128xf32> to vector<8xf32>
    %6 = vector.shape_cast %5 : vector<8xf32> to vector<8x1xf32>
    %cst_3 = arith.constant 1.280000e+02 : f32
    %7 = vector.broadcast %cst_3 : f32 to vector<8x1xf32>
    %8 = arith.divf %6, %7 : vector<8x1xf32>
    %9 = vector.broadcast %8 : vector<8x1xf32> to vector<8x128xf32>
    %10 = arith.subf %4, %9 : vector<8x128xf32>
    %11 = arith.mulf %10, %10 : vector<8x128xf32>
    %cst_4 = arith.constant dense<0.000000e+00> : vector<8xf32>
    %12 = vector.multi_reduction <add>, %11, %cst_4 [1] : vector<8x128xf32> to vector<8xf32>
    %13 = vector.shape_cast %12 : vector<8xf32> to vector<8x1xf32>
    %cst_5 = arith.constant 1.280000e+02 : f32
    %14 = vector.broadcast %cst_5 : f32 to vector<8x1xf32>
    %15 = arith.divf %13, %14 : vector<8x1xf32>
    %16 = vector.broadcast %8 : vector<8x1xf32> to vector<8x128xf32>
    %17 = arith.subf %4, %16 : vector<8x128xf32>
    %cst_6 = arith.constant 9.99999974E-6 : f32
    %18 = vector.broadcast %cst_6 : f32 to vector<8x1xf32>
    %19 = arith.addf %15, %18 : vector<8x1xf32>
    %20 = math.rsqrt %19 : vector<8x1xf32>
    %21 = vector.broadcast %20 : vector<8x1xf32> to vector<8x128xf32>
    %22 = arith.mulf %17, %21 : vector<8x128xf32>
    %c0_7 = arith.constant 0 : index
    %c0_8 = arith.constant 0 : index
    %c0_9 = arith.constant 0 : index
    %23 = vector.load %arg7[%c0_7, %c0_8, %c0_9] : memref<1x1x128xf32, #tpu.memory_space<vmem>>, vector<1x1x128xf32>
    %24 = vector.shape_cast %23 : vector<1x1x128xf32> to vector<1x128xf32>
    %25 = vector.broadcast %24 : vector<1x128xf32> to vector<8x128xf32>
    %26 = arith.mulf %22, %25 : vector<8x128xf32>
    %c0_10 = arith.constant 0 : index
    %c0_11 = arith.constant 0 : index
    %c0_12 = arith.constant 0 : index
    %27 = vector.load %arg8[%c0_10, %c0_11, %c0_12] : memref<1x1x128xf32, #tpu.memory_space<vmem>>, vector<1x1x128xf32>
    %28 = vector.shape_cast %27 : vector<1x1x128xf32> to vector<1x128xf32>
    %29 = vector.broadcast %28 : vector<1x128xf32> to vector<8x128xf32>
    %30 = arith.addf %26, %29 : vector<8x128xf32>
    %31 = arith.truncf %30 : vector<8x128xf32> to vector<8x128xbf16>
    %c0_13 = arith.constant 0 : index
    %c0_14 = arith.constant 0 : index
    %c0_15 = arith.constant 0 : index
    %32 = vector.load %arg3[%c0_13, %c0_14, %c0_15] : memref<1x128x384xbf16, #tpu.memory_space<vmem>>, vector<1x128x384xbf16>
    %33 = vector.shape_cast %32 : vector<1x128x384xbf16> to vector<128x384xbf16>
    %cst_16 = arith.constant dense<0.000000e+00> : vector<8x384xf32>
    %34 = tpu.matmul %31, %33, %cst_16 {dimension_numbers = #tpu.dot_dimension_numbers<[1], [0], [0], [1], [0, 0, 1, 1], [], []>} : vector<8x128xbf16>, vector<128x384xbf16>, vector<8x384xf32> -> vector<8x384xf32>
    %c0_17 = arith.constant 0 : index
    %c0_18 = arith.constant 0 : index
    %c0_19 = arith.constant 0 : index
    %35 = vector.load %arg4[%c0_17, %c0_18, %c0_19] : memref<1x1x384xf32, #tpu.memory_space<vmem>>, vector<1x1x384xf32>
    %36 = vector.shape_cast %35 : vector<1x1x384xf32> to vector<1x384xf32>
    %37 = vector.broadcast %36 : vector<1x384xf32> to vector<8x384xf32>
    %38 = arith.addf %34, %37 : vector<8x384xf32>
    %39 = vector.extract_strided_slice %38 {offsets = [0, 0], sizes = [8, 128], strides = [1, 1]} : vector<8x384xf32> to vector<8x128xf32>
    %40 = vector.shape_cast %39 : vector<8x128xf32> to vector<8x4x32xf32>
    %41 = tpu.transpose %40, [1, 0, 2] : vector<8x4x32xf32> -> vector<4x8x32xf32>
    %42 = vector.extract_strided_slice %38 {offsets = [0, 128], sizes = [8, 128], strides = [1, 1]} : vector<8x384xf32> to vector<8x128xf32>
    %43 = vector.shape_cast %42 : vector<8x128xf32> to vector<8x4x32xf32>
    %44 = tpu.transpose %43, [1, 0, 2] : vector<8x4x32xf32> -> vector<4x8x32xf32>
    %45 = vector.extract_strided_slice %38 {offsets = [0, 256], sizes = [8, 128], strides = [1, 1]} : vector<8x384xf32> to vector<8x128xf32>
    %46 = vector.shape_cast %45 : vector<8x128xf32> to vector<8x4x32xf32>
    %47 = tpu.transpose %46, [1, 0, 2] : vector<8x4x32xf32> -> vector<4x8x32xf32>
    %48 = arith.truncf %41 : vector<4x8x32xf32> to vector<4x8x32xbf16>
    %49 = arith.truncf %44 : vector<4x8x32xf32> to vector<4x8x32xbf16>
    "tpu.trace_start"() <{level = 10 : i32, message = "hqd,hkd->hqk"}> : () -> ()
    %cst_20 = arith.constant dense<0.000000e+00> : vector<4x8x8xf32>
    %50 = tpu.matmul %48, %49, %cst_20 {dimension_numbers = #tpu.dot_dimension_numbers<[2], [2], [1], [1], [0, 0, 0, 1, 1, 1], [0], [0]>} : vector<4x8x32xbf16>, vector<4x8x32xbf16>, vector<4x8x8xf32> -> vector<4x8x8xf32>
    "tpu.trace_stop"() : () -> ()
    %cst_21 = arith.constant dense<0xFF800000> : vector<4x8xf32>
    %51 = vector.multi_reduction <maximumf>, %50, %cst_21 [2] : vector<4x8x8xf32> to vector<4x8xf32>
    %52 = vector.shape_cast %51 : vector<4x8xf32> to vector<4x8x1xf32>
    %53 = vector.broadcast %52 : vector<4x8x1xf32> to vector<4x8x8xf32>
    %54 = arith.subf %50, %53 : vector<4x8x8xf32>
    %55 = math.exp %54 : vector<4x8x8xf32>
    %cst_22 = arith.constant dense<0.000000e+00> : vector<4x8xf32>
    %56 = vector.multi_reduction <add>, %55, %cst_22 [2] : vector<4x8x8xf32> to vector<4x8xf32>
    %57 = vector.shape_cast %56 : vector<4x8xf32> to vector<4x8x1xf32>
    %58 = tpu.reciprocal %57 {approx = true} : vector<4x8x1xf32> -> vector<4x8x1xf32>
    %59 = vector.broadcast %58 : vector<4x8x1xf32> to vector<4x8x8xf32>
    %60 = arith.mulf %55, %59 : vector<4x8x8xf32>
    %61 = arith.truncf %60 : vector<4x8x8xf32> to vector<4x8x8xbf16>
    %62 = arith.truncf %47 : vector<4x8x32xf32> to vector<4x8x32xbf16>
    "tpu.trace_start"() <{level = 10 : i32, message = "hqk,hkd->hqd"}> : () -> ()
    %cst_23 = arith.constant dense<0.000000e+00> : vector<4x8x32xf32>
    %63 = tpu.matmul %61, %62, %cst_23 {dimension_numbers = #tpu.dot_dimension_numbers<[2], [1], [1], [2], [0, 0, 0, 1, 1, 2], [0], [0]>} : vector<4x8x8xbf16>, vector<4x8x32xbf16>, vector<4x8x32xf32> -> vector<4x8x32xf32>
    "tpu.trace_stop"() : () -> ()
    %64 = tpu.transpose %63, [1, 0, 2] : vector<4x8x32xf32> -> vector<8x4x32xf32>
    %65 = vector.shape_cast %64 : vector<8x4x32xf32> to vector<8x128xf32>
    %66 = arith.truncf %65 : vector<8x128xf32> to vector<8x128xbf16>
    %c0_24 = arith.constant 0 : index
    %c0_25 = arith.constant 0 : index
    %c0_26 = arith.constant 0 : index
    %67 = vector.load %arg5[%c0_24, %c0_25, %c0_26] : memref<1x128x128xbf16, #tpu.memory_space<vmem>>, vector<1x128x128xbf16>
    %68 = vector.shape_cast %67 : vector<1x128x128xbf16> to vector<128x128xbf16>
    %cst_27 = arith.constant dense<0.000000e+00> : vector<8x128xf32>
    %69 = tpu.matmul %66, %68, %cst_27 {dimension_numbers = #tpu.dot_dimension_numbers<[1], [0], [0], [1], [0, 0, 1, 1], [], []>} : vector<8x128xbf16>, vector<128x128xbf16>, vector<8x128xf32> -> vector<8x128xf32>
    %c0_28 = arith.constant 0 : index
    %c0_29 = arith.constant 0 : index
    %c0_30 = arith.constant 0 : index
    %70 = vector.load %arg6[%c0_28, %c0_29, %c0_30] : memref<1x1x128xf32, #tpu.memory_space<vmem>>, vector<1x1x128xf32>
    %71 = vector.shape_cast %70 : vector<1x1x128xf32> to vector<1x128xf32>
    %72 = vector.broadcast %71 : vector<1x128xf32> to vector<8x128xf32>
    %73 = arith.addf %69, %72 : vector<8x128xf32>
    %74 = arith.addf %4, %73 : vector<8x128xf32>
    %cst_31 = arith.constant dense<0.000000e+00> : vector<8xf32>
    %75 = vector.multi_reduction <add>, %74, %cst_31 [1] : vector<8x128xf32> to vector<8xf32>
    %76 = vector.shape_cast %75 : vector<8xf32> to vector<8x1xf32>
    %cst_32 = arith.constant 1.280000e+02 : f32
    %77 = vector.broadcast %cst_32 : f32 to vector<8x1xf32>
    %78 = arith.divf %76, %77 : vector<8x1xf32>
    %79 = vector.broadcast %78 : vector<8x1xf32> to vector<8x128xf32>
    %80 = arith.subf %74, %79 : vector<8x128xf32>
    %81 = arith.mulf %80, %80 : vector<8x128xf32>
    %cst_33 = arith.constant dense<0.000000e+00> : vector<8xf32>
    %82 = vector.multi_reduction <add>, %81, %cst_33 [1] : vector<8x128xf32> to vector<8xf32>
    %83 = vector.shape_cast %82 : vector<8xf32> to vector<8x1xf32>
    %cst_34 = arith.constant 1.280000e+02 : f32
    %84 = vector.broadcast %cst_34 : f32 to vector<8x1xf32>
    %85 = arith.divf %83, %84 : vector<8x1xf32>
    %86 = vector.broadcast %78 : vector<8x1xf32> to vector<8x128xf32>
    %87 = arith.subf %74, %86 : vector<8x128xf32>
    %cst_35 = arith.constant 9.99999974E-6 : f32
    %88 = vector.broadcast %cst_35 : f32 to vector<8x1xf32>
    %89 = arith.addf %85, %88 : vector<8x1xf32>
    %90 = math.rsqrt %89 : vector<8x1xf32>
    %91 = vector.broadcast %90 : vector<8x1xf32> to vector<8x128xf32>
    %92 = arith.mulf %87, %91 : vector<8x128xf32>
    %c0_36 = arith.constant 0 : index
    %c0_37 = arith.constant 0 : index
    %c0_38 = arith.constant 0 : index
    %93 = vector.load %arg9[%c0_36, %c0_37, %c0_38] : memref<1x1x128xf32, #tpu.memory_space<vmem>>, vector<1x1x128xf32>
    %94 = vector.shape_cast %93 : vector<1x1x128xf32> to vector<1x128xf32>
    %95 = vector.broadcast %94 : vector<1x128xf32> to vector<8x128xf32>
    %96 = arith.mulf %92, %95 : vector<8x128xf32>
    %c0_39 = arith.constant 0 : index
    %c0_40 = arith.constant 0 : index
    %c0_41 = arith.constant 0 : index
    %97 = vector.load %arg10[%c0_39, %c0_40, %c0_41] : memref<1x1x128xf32, #tpu.memory_space<vmem>>, vector<1x1x128xf32>
    %98 = vector.shape_cast %97 : vector<1x1x128xf32> to vector<1x128xf32>
    %99 = vector.broadcast %98 : vector<1x128xf32> to vector<8x128xf32>
    %100 = arith.addf %96, %99 : vector<8x128xf32>
    %101 = arith.truncf %100 : vector<8x128xf32> to vector<8x128xbf16>
    %c0_42 = arith.constant 0 : index
    %c0_43 = arith.constant 0 : index
    %c0_44 = arith.constant 0 : index
    %102 = vector.load %arg11[%c0_42, %c0_43, %c0_44] : memref<1x128x512xbf16, #tpu.memory_space<vmem>>, vector<1x128x512xbf16>
    %103 = vector.shape_cast %102 : vector<1x128x512xbf16> to vector<128x512xbf16>
    %cst_45 = arith.constant dense<0.000000e+00> : vector<8x512xf32>
    %104 = tpu.matmul %101, %103, %cst_45 {dimension_numbers = #tpu.dot_dimension_numbers<[1], [0], [0], [1], [0, 0, 1, 1], [], []>} : vector<8x128xbf16>, vector<128x512xbf16>, vector<8x512xf32> -> vector<8x512xf32>
    %c0_46 = arith.constant 0 : index
    %c0_47 = arith.constant 0 : index
    %c0_48 = arith.constant 0 : index
    %105 = vector.load %arg12[%c0_46, %c0_47, %c0_48] : memref<1x1x512xf32, #tpu.memory_space<vmem>>, vector<1x1x512xf32>
    %106 = vector.shape_cast %105 : vector<1x1x512xf32> to vector<1x512xf32>
    %107 = vector.broadcast %106 : vector<1x512xf32> to vector<8x512xf32>
    %108 = arith.addf %104, %107 : vector<8x512xf32>
    %cst_49 = arith.constant 1.702000e+00 : f32
    %109 = vector.broadcast %cst_49 : f32 to vector<8x512xf32>
    %110 = arith.mulf %109, %108 : vector<8x512xf32>
    %111 = arith.negf %110 : vector<8x512xf32>
    %112 = math.exp %111 : vector<8x512xf32>
    %cst_50 = arith.constant 1.000000e+00 : f32
    %113 = vector.broadcast %cst_50 : f32 to vector<8x512xf32>
    %114 = arith.addf %113, %112 : vector<8x512xf32>
    %115 = arith.divf %113, %114 : vector<8x512xf32>
    %116 = arith.mulf %108, %115 : vector<8x512xf32>
    %117 = arith.truncf %116 : vector<8x512xf32> to vector<8x512xbf16>
    %c0_51 = arith.constant 0 : index
    %c0_52 = arith.constant 0 : index
    %c0_53 = arith.constant 0 : index
    %118 = vector.load %arg13[%c0_51, %c0_52, %c0_53] : memref<1x512x128xbf16, #tpu.memory_space<vmem>>, vector<1x512x128xbf16>
    %119 = vector.shape_cast %118 : vector<1x512x128xbf16> to vector<512x128xbf16>
    %cst_54 = arith.constant dense<0.000000e+00> : vector<8x128xf32>
    %120 = tpu.matmul %117, %119, %cst_54 {dimension_numbers = #tpu.dot_dimension_numbers<[1], [0], [0], [1], [0, 0, 1, 1], [], []>} : vector<8x512xbf16>, vector<512x128xbf16>, vector<8x128xf32> -> vector<8x128xf32>
    %c0_55 = arith.constant 0 : index
    %c0_56 = arith.constant 0 : index
    %c0_57 = arith.constant 0 : index
    %121 = vector.load %arg14[%c0_55, %c0_56, %c0_57] : memref<1x1x128xf32, #tpu.memory_space<vmem>>, vector<1x1x128xf32>
    %122 = vector.shape_cast %121 : vector<1x1x128xf32> to vector<1x128xf32>
    %123 = vector.broadcast %122 : vector<1x128xf32> to vector<8x128xf32>
    %124 = arith.addf %120, %123 : vector<8x128xf32>
    %125 = arith.addf %74, %124 : vector<8x128xf32>
    %c0_58 = arith.constant 0 : index
    %c0_59 = arith.constant 0 : index
    %c0_60 = arith.constant 0 : index
    %126 = vector.load %arg15[%c0_58, %c0_59, %c0_60] : memref<1x8x128xf32, #tpu.memory_space<vmem>>, vector<1x8x128xf32>
    %127 = vector.shape_cast %126 : vector<1x8x128xf32> to vector<8x128xf32>
    %128 = vector.shape_cast %125 : vector<8x128xf32> to vector<1x8x128xf32>
    tpu.vector_store %arg15[%c0_58, %c0_59, %c0_60], %128 {strides = array<i32>} : memref<1x8x128xf32, #tpu.memory_space<vmem>>, vector<1x8x128xf32>,
    return
  }
  func.func @transform_0(%arg0: i32, %arg1: i32) -> (i32, i32, i32) {
    %c0_i32 = arith.constant 0 : i32
    %c0_i32_0 = arith.constant 0 : i32
    %c0_i32_1 = arith.constant 0 : i32
    return %arg0, %c0_i32, %c0_i32_0 : i32, i32, i32
  }
  func.func @transform_1(%arg0: i32, %arg1: i32) -> (i32, i32, i32) {
    %c0_i32 = arith.constant 0 : i32
    %c0_i32_0 = arith.constant 0 : i32
    %c0_i32_1 = arith.constant 0 : i32
    return %arg1, %c0_i32, %c0_i32_0 : i32, i32, i32
  }
  func.func @transform_2(%arg0: i32, %arg1: i32) -> (i32, i32, i32) {
    %c0_i32 = arith.constant 0 : i32
    %c0_i32_0 = arith.constant 0 : i32
    %c0_i32_1 = arith.constant 0 : i32
    return %arg1, %c0_i32, %c0_i32_0 : i32, i32, i32
  }
  func.func @transform_3(%arg0: i32, %arg1: i32) -> (i32, i32, i32) {
    %c0_i32 = arith.constant 0 : i32
    %c0_i32_0 = arith.constant 0 : i32
    %c0_i32_1 = arith.constant 0 : i32
    return %arg1, %c0_i32, %c0_i32_0 : i32, i32, i32
  }
  func.func @transform_4(%arg0: i32, %arg1: i32) -> (i32, i32, i32) {
    %c0_i32 = arith.constant 0 : i32
    %c0_i32_0 = arith.constant 0 : i32
    %c0_i32_1 = arith.constant 0 : i32
    return %arg1, %c0_i32, %c0_i32_0 : i32, i32, i32
  }
  func.func @transform_5(%arg0: i32, %arg1: i32) -> (i32, i32, i32) {
    %c0_i32 = arith.constant 0 : i32
    %c0_i32_0 = arith.constant 0 : i32
    %c0_i32_1 = arith.constant 0 : i32
    return %arg1, %c0_i32, %c0_i32_0 : i32, i32, i32
  }
  func.func @transform_6(%arg0: i32, %arg1: i32) -> (i32, i32, i32) {
    %c0_i32 = arith.constant 0 : i32
    %c0_i32_0 = arith.constant 0 : i32
    %c0_i32_1 = arith.constant 0 : i32
    return %arg1, %c0_i32, %c0_i32_0 : i32, i32, i32
  }
  func.func @transform_7(%arg0: i32, %arg1: i32) -> (i32, i32, i32) {
    %c0_i32 = arith.constant 0 : i32
    %c0_i32_0 = arith.constant 0 : i32
    %c0_i32_1 = arith.constant 0 : i32
    return %arg1, %c0_i32, %c0_i32_0 : i32, i32, i32
  }
  func.func @transform_8(%arg0: i32, %arg1: i32) -> (i32, i32, i32) {
    %c0_i32 = arith.constant 0 : i32
    %c0_i32_0 = arith.constant 0 : i32
    %c0_i32_1 = arith.constant 0 : i32
    return %arg1, %c0_i32, %c0_i32_0 : i32, i32, i32
  }
  func.func @transform_9(%arg0: i32, %arg1: i32) -> (i32, i32, i32) {
    %c0_i32 = arith.constant 0 : i32
    %c0_i32_0 = arith.constant 0 : i32
    %c0_i32_1 = arith.constant 0 : i32
    return %arg1, %c0_i32, %c0_i32_0 : i32, i32, i32
  }
  func.func @transform_10(%arg0: i32, %arg1: i32) -> (i32, i32, i32) {
    %c0_i32 = arith.constant 0 : i32
    %c0_i32_0 = arith.constant 0 : i32
    %c0_i32_1 = arith.constant 0 : i32
    return %arg1, %c0_i32, %c0_i32_0 : i32, i32, i32
  }
  func.func @transform_11(%arg0: i32, %arg1: i32) -> (i32, i32, i32) {
    %c0_i32 = arith.constant 0 : i32
    %c0_i32_0 = arith.constant 0 : i32
    %c0_i32_1 = arith.constant 0 : i32
    return %arg1, %c0_i32, %c0_i32_0 : i32, i32, i32
  }
  func.func @transform_12(%arg0: i32, %arg1: i32) -> (i32, i32, i32) {
    %c0_i32 = arith.constant 0 : i32
    %c0_i32_0 = arith.constant 0 : i32
    %c0_i32_1 = arith.constant 0 : i32
    return %arg1, %c0_i32, %c0_i32_0 : i32, i32, i32
  }
  func.func @transform_13(%arg0: i32, %arg1: i32) -> (i32, i32, i32) {
    %c0_i32 = arith.constant 0 : i32
    %c0_i32_0 = arith.constant 0 : i32
    %c0_i32_1 = arith.constant 0 : i32
    return %arg0, %c0_i32, %c0_i32_0 : i32, i32, i32
  }
}

</mosaic_0001>

<bundles_post_ra>
// kernel: tpu_custom_call.1
= control target key start
LH: loop header
LB: loop body
LE: loop exit
PB: predicated region body
PF: predicated region fallthrough
CT: control target
= control target key end

     0   :  { %s4963_s0 = inlined_call_operand.hbm [shape: f32[2,8,128], index: 0, kind: input, shape index: {}]   ;;  %s4964_s1 = inlined_call_operand.hbm [shape: bf16[2,128,384], index: 1, kind: input, shape index: {}]   ;;  %s4965_s2 = inlined_call_operand.hbm [shape: f32[2,1,384], index: 2, kind: input, shape index: {}]   ;;  %s4966_s3 = inlined_call_operand.hbm [shape: bf16[2,128,128], index: 3, kind: input, shape index: {}]   ;;  %s4967_s4 = inlined_call_operand.vmem [shape: f32[2,1,128], index: 4, kind: input, shape index: {}]   ;;  %s4968_s5 = inlined_call_operand.vmem [shape: f32[2,1,128], index: 5, kind: input, shape index: {}]   ;;  %s4969_s6 = inlined_call_operand.vmem [shape: f32[2,1,128], index: 6, kind: input, shape index: {}]   ;;  %s4970_s7 = inlined_call_operand.vmem [shape: f32[2,1,128], index: 7, kind: input, shape index: {}]   ;;  %s4971_s8 = inlined_call_operand.hbm [shape: f32[2,1,128], index: 8, kind: input, shape index: {}]   ;;  %s4972_s9 = inlined_call_operand.hbm [shape: bf16[2,128,512], index: 9, kind: input, shape index: {}]   ;;  %s4973_s10 = inlined_call_operand.vmem [shape: f32[2,1,512], index: 10, kind: input, shape index: {}]   ;;  %s4974_s11 = inlined_call_operand.hbm [shape: bf16[2,512,128], index: 11, kind: input, shape index: {}]   ;;  %s4975_s12 = inlined_call_operand.vmem [shape: f32[2,1,128], index: 12, kind: input, shape index: {}]   ;;  %s4976_s13 = inlined_call_operand.hbm [shape: f32[2,8,128], index: 13, kind: output, shape index: {}]  }
   0x1   :  { %5003 = sst [smem:[#allocation37_spill]] %s4963_s0 }
   0x2   :  { %5004 = sst [smem:[#allocation38_spill]] %s4964_s1 }
   0x3   :  { %5005 = sst [smem:[#allocation39_spill]] %s4965_s2 }
   0x4   :  { %5006 = sst [smem:[#allocation40_spill]] %s4966_s3 }
   0x5   :  { %5007 = sst [smem:[#allocation41_spill]] %s4967_s4 }
   0x6   :  { %5008 = sst [smem:[#allocation42_spill]] %s4968_s5 }
   0x7   :  { %5009 = sst [smem:[#allocation43_spill]] %s4969_s6 }
   0x8   :  { %5010 = sst [smem:[#allocation44_spill]] %s4970_s7 }
   0x9   :  { %5011 = sst [smem:[#allocation45_spill]] %s4971_s8 }
   0xa   :  { %5012 = sst [smem:[#allocation46_spill]] %s4972_s9 }
   0xb   :  { %5013 = sst [smem:[#allocation47_spill]] %s4973_s10 }
   0xc   :  { %5014 = sst [smem:[#allocation48_spill]] %s4974_s11 }
   0xd   :  { %5015 = sst [smem:[#allocation49_spill]] %s4975_s12 }
   0xe   :  { %5016 = sst [smem:[#allocation50_spill]] %s4976_s13 }
   0xf   :  { %18 = vsyncpa [#allocation3], 0 }
  0x10   :  { %20 = vsyncpa [#allocation3 + $0x1], 0 }
  0x11   :  { %21 = vsyncpa [#allocation6], 0 }
  0x12   :  { %23 = vsyncpa [#allocation6 + $0x1], 0 }
  0x13   :  { %24 = vsyncpa [#allocation9], 0 }
  0x14   :  { %26 = vsyncpa [#allocation9 + $0x1], 0 }
  0x15   :  { %27 = vsyncpa [#allocation12], 0 }
  0x16   :  { %29 = vsyncpa [#allocation12 + $0x1], 0 }
  0x17   :  { %30 = vsyncpa [#allocation4], 0 }
  0x18   :  { %32 = vsyncpa [#allocation4 + $0x1], 0  ;;  %s4243_s25 = smov 0   ;;  %s4245_s26 = smov 0  }
  0x19   :  { %s4247_s27 = smov 0   ;;  %s4249_s28 = smov 0  }
  0x1a   :  { %s4251_s29 = smov 0   ;;  %s4253_s30 = smov 0  }
  0x1b   :  { %s4255_s14 = smov 0   ;;  %s4257_s15 = smov 0  }
  0x1c   :  { %s4259_s16 = smov 0   ;;  %s4261_s17 = smov 0  }
  0x1d   :  { %s4263_s18 = smov 0  }
  0x1e LB: > { %5017 = sst [smem:[#allocation20_spill]] %s4113_s26  ;;  %p65_p0 = scmp.eq.s32.totalorder %s4149_s18, 0  ;;  %s4149_s18 = sphi %s4263_s18, %s38_s18   ;;  %s4145_s17 = sphi %s4261_s17, %s5094_s17   ;;  %s4141_s16 = sphi %s4259_s16, %s5093_s16   ;;  %s4137_s15 = sphi %s4257_s15, %s5092_s15   ;;  %s4133_s14 = sphi %s4255_s14, %s5091_s14   ;;  %s4129_s30 = sphi %s4253_s30, %s5090_s30   ;;  %s4125_s29 = sphi %s4251_s29, %s5089_s29   ;;  %s4121_s28 = sphi %s4249_s28, %s5088_s28   ;;  %s4117_s27 = sphi %s4247_s27, %s5087_s27   ;;  %s4113_s26 = sphi %s4245_s26, %s5086_s26   ;;  %s4109_s25 = sphi %s4243_s25, %s5085_s25  }
  0x1f   : > { %5018 = sst [smem:[#allocation21_spill]] %s4117_s27  ;;  %p90_p1 = scmp.ne.s32.totalorder %s4117_s27, %s4113_s26 }
  0x20   : > { %5019 = sst [smem:[#allocation22_spill]] %s4121_s28  ;;  %p4983_p2 = scmp.lt.s32.totalorder %s4149_s18, 4 }
  0x21   : > { %5020 = sst [smem:[#allocation23_spill]] %s4125_s29  ;;  %s4304_s20 = sand.u32 1, %s4149_s18  }
  0x22   : > { %5021 = sst [smem:[#allocation24_spill]] %s4129_s30  ;;  %p92_p3 = por %p90_p1, %p65_p0 }
  0x23   : > { %5022 = sst [smem:[#allocation25_spill]] %s4133_s14  ;;  %s4309_s21 = sand.u32 1, %s4117_s27  }
  0x24   : > { %5023 = sst [smem:[#allocation26_spill]] %s4137_s15  ;;  %s3513_s22 = smul.u32 3072, %s4141_s16 }
  0x25   : > { %5024 = sst [smem:[#allocation27_spill]] %s4141_s16  ;;  %s3512_s23 = smul.u32 192, %s4309_s21 }
  0x26   : > { %5025 = sst [smem:[#allocation28_spill]] %s4145_s17  ;;  %p4315_p4 = pnand %p4983_p2, %p92_p3 }
  0x27   : > { %5026 = sst [smem:[#allocation29_spill]] %s4149_s18  ;;  %s454_s10 = scalar_lea.vmem [#allocation5], %s3512_s23 }
  0x28   : > { %s5028_s1 = sld [smem:[#allocation38_spill]]  ;;  %s461_s12 = sshll.u32 %s454_s10, 4  ;;  %s462_s12 = int_to_ptr.vmem [resolvable:$true] %s461_s12 }
  0x29   : > { %p3209_p5 = scmp.ge.s32.totalorder %s4149_s18, 1  ;;  %s4979_s7 = scalar_lea.sflag [#allocation6], %s4304_s20 }
  0x2a   : > { %p4326_p6 = pneg %p4315_p4  ;;  %s3834_s5 = scalar_lea.vmem %s462_s12, 3072 }
  0x2b   : > { %p3835_p7 = scmp.ne.s32.totalorder %s462_s12, %s3834_s5  ;;  %s4151_s4 = smov [#allocation5]  }
  0x2c   : > { %s3839_s13 = sshll.u32 %s4151_s4, 4  ;;  %s3840_s13 = int_to_ptr.vmem [resolvable:$false] %s3839_s13 }
  0x2d   : > { %p3837_p8 = pnand %p3835_p7, %p4326_p6  ;;  %s3841_s15 = scalar_lea.vmem %s3840_s13, 6144 }
  0x2e   : > { %s460_s19 = scalar_lea.hbm %s5028_s1, %s3513_s22  ;;  %p3842_p10 = scmp.lt.s32.totalorder %s462_s12, %s3840_s13 }
  0x2f   : > { %p3838_p9 = pneg %p3837_p8  ;;  %p3843_p11 = scmp.lt.s32.totalorder %s3841_s15, %s3834_s5 }
  0x31   : > { %p3844_p12 = por %p3843_p11, %p3842_p10 }
  0x33   : > { %p3845_p13 = pnand %p3844_p12, %p3838_p9 }
  0x35   : > { %3848 = shalt.err (!%p3845_p13)
}
  0x36   : > { %s4152_s10 = smov 192   ;;  %s4153_s22 = smov 12  }
  0x37   : > { %3540 = dma.hbm_to_vmem [thread:$0]  (!%p4315_p4), %s460_s19, 3072, %s462_s12, %s4979_s7, %s4152_s10, %s4152_s10, %s4153_s22  }
  0x38   : > { %p605_p1 = scmp.lt.s32.totalorder %s4149_s18, 5  ;;  %s3199_s4 = sshll.u32 %s4309_s21, 6 }
  0x39   : > { %s3343_s23 = sshll.u32 %s4141_s16, 10  ;;  %s5032_s3 = sld [smem:[#allocation40_spill]] }
  0x3a   : > { %p4341_p3 = pnand %p3209_p5, %p605_p1  ;;  %s494_s14 = scalar_lea.vmem [#allocation8], %s3199_s4 }
  0x3b   : > { %s501_s8 = sshll.u32 %s494_s14, 4  ;;  %s4988_s2 = scalar_lea.sflag [#allocation9], %s4304_s20  ;;  %s502_s8 = int_to_ptr.vmem [resolvable:$true] %s501_s8 }
  0x3c   : > { %s5030_s5 = scalar_select %p4341_p3, 1, 0 }
  0x3d   : > { %s3862_s0 = scalar_lea.vmem %s502_s8, 1024  ;;  %s4154_s12 = smov [#allocation8]  }
  0x3e   : > { %5031 = sst [smem:[#allocation30_spill]] %s5030_s5  ;;  %p3863_p7 = scmp.ne.s32.totalorder %s502_s8, %s3862_s0 }
  0x3f   : > { %s500_s1 = scalar_lea.hbm %s5032_s3, %s3343_s23  ;;  %s3867_s19 = sshll.u32 %s4154_s12, 4  ;;  %s3868_s19 = int_to_ptr.vmem [resolvable:$false] %s3867_s19 }
  0x40   : > { %p3865_p8 = pnand %p3863_p7, %p4326_p6  ;;  %s3869_s10 = scalar_lea.vmem %s3868_s19, 2048 }
  0x41   : > { %p3870_p5 = scmp.lt.s32.totalorder %s502_s8, %s3868_s19  ;;  %p3871_p10 = scmp.lt.s32.totalorder %s3869_s10, %s3862_s0 }
  0x42   : > { %p3866_p9 = pneg %p3865_p8 }
  0x43   : > { %p3872_p11 = por %p3871_p10, %p3870_p5 }
  0x45   : > { %p3873_p12 = pnand %p3872_p11, %p3866_p9 }
  0x47   : > { %3876 = shalt.err (!%p3873_p12)
}
  0x48   : > { %s4982_s22 = smov 64   ;;  %s4986_s14 = smov 4  }
  0x49   : > { %3546 = dma.hbm_to_vmem [thread:$0]  (!%p4315_p4), %s500_s1, 1024, %s502_s8, %s4988_s2, %s4982_s22, %s4982_s22, %s4986_s14  }
  0x4a   : > { %s3203_s4 = sshll.u32 %s4309_s21, 8  ;;  %s3344_s23 = sshll.u32 %s4141_s16, 12 }
  0x4b   : > { %s5033_s9 = sld [smem:[#allocation46_spill]]  ;;  %s556_s12 = scalar_lea.vmem [#allocation11], %s3203_s4 }
  0x4c   : > { %s563_s19 = sshll.u32 %s556_s12, 4  ;;  %s4984_s10 = scalar_lea.sflag [#allocation12], %s4304_s20  ;;  %s564_s19 = int_to_ptr.vmem [resolvable:$true] %s563_s19 }
  0x4d   : > { %s3890_s7 = scalar_lea.vmem %s564_s19, 4096  ;;  %s4157_s3 = smov [#allocation11]  }
  0x4e   : > { %p3891_p13 = scmp.ne.s32.totalorder %s564_s19, %s3890_s7  ;;  %s3895_s5 = sshll.u32 %s4157_s3, 4  ;;  %s3896_s5 = int_to_ptr.vmem [resolvable:$false] %s3895_s5 }
  0x4f   : > { %s3897_s26 = scalar_lea.vmem %s3896_s5, 8192  ;;  %p3898_p8 = scmp.lt.s32.totalorder %s564_s19, %s3896_s5 }
  0x50   : > { %p3893_p1 = pnand %p3891_p13, %p4326_p6  ;;  %p3899_p9 = scmp.lt.s32.totalorder %s3897_s26, %s3890_s7 }
  0x51   : > { %s562_s15 = scalar_lea.hbm %s5033_s9, %s3344_s23 }
  0x52   : > { %p3894_p7 = pneg %p3893_p1  ;;  %p3900_p5 = por %p3899_p9, %p3898_p8 }
  0x54   : > { %p3901_p10 = pnand %p3900_p5, %p3894_p7 }
  0x56   : > { %3904 = shalt.err (!%p3901_p10)
}
  0x57   : > { %s4158_s1 = smov 256   ;;  %s4159_s3 = smov 16  }
  0x58   : > { %3552 = dma.hbm_to_vmem [thread:$0]  (!%p4315_p4), %s562_s15, 4096, %s564_s19, %s4984_s10, %s4158_s1, %s4158_s1, %s4159_s3  }
  0x59   : > { %s5034_s11 = sld [smem:[#allocation48_spill]]  ;;  %s584_s5 = scalar_lea.vmem [#allocation13], %s3203_s4 }
  0x5a   : > { %s591_s0 = sshll.u32 %s584_s5, 4  ;;  %s4378_s13 = sadd.s32 4294967295, %s4149_s18   ;;  %s4375_s0 = int_to_ptr.vmem [resolvable:$true] %s591_s0 }
  0x5b   : > { %s3192_s12 = sadd.s32 4294967294, %s4149_s18   ;;  %s47_s22 = sadd.s32 1, %s4141_s16 }
  0x5c   : > { %s50_s15 = sadd.s32 1, %s4145_s17  ;;  %s5035_s19 = sld [smem:[#allocation20_spill]] }
  0x5d   : > { %p48_p11 = scmp.ge.s32.totalorder %s47_s22, 2  ;;  %p64_p12 = scmp.ne.s32.totalorder %s4129_s30, %s4125_s29 }
  0x5e   : > { %p4985_p13 = scmp.ne.s32.totalorder %s4125_s29, %s4121_s28  ;;  %p71_p7 = scmp.eq.s32.totalorder %s4378_s13, 0 }
  0x5f   : > { %s4373_s26 = scalar_lea.hbm %s5034_s11, %s3344_s23  ;;  %s57_s23 = sadd.s32 1, %s4129_s30 }
  0x60   : > { %s5096_s22 = smov (%p48_p11, %s47_s22), 0  ;;  %s5098_s15 = smov (!%p48_p11, %s50_s15), %s4145_s17 }
  0x61   : > { %5036 = sst [smem:[#allocation31_spill]] %s5096_s22  ;;  %p4396_p1 = por %p65_p0, %p64_p12 }
  0x62   : > { %p52_p8 = scmp.ge.s32.totalorder %s5098_s15, 2  ;;  %s80_s1 = ssub.s32 %s4141_s16, %s5096_s22 }
  0x63   : > { %p4406_p9 = por %p71_p7, %p4985_p13  ;;  %p81_p5 = scmp.eq.s32.totalorder %s80_s1, 0 }
  0x64   : > { %s5100_s15 = smov (%p52_p8, %s5098_s15), 0  ;;  %s5040_s7 = sadd.s32 1, %s4117_s27 }
  0x65   : > { %s5038_s3 = scalar_select %p4406_p9, 1, 0 }
  0x66   : > { %5039 = sst [smem:[#allocation32_spill]] %s5100_s15  ;;  %s54_s5 = ssub.s32 %s4145_s17, %s5100_s15 }
  0x67   : > { %s4415_s8 = scalar_select %p81_p5, %s4117_s27, %s5040_s7  }
  0x68   : > { %p96_p0 = scmp.ne.s32.totalorder %s5035_s19, %s4109_s25  ;;  %p55_p10 = scmp.eq.s32.totalorder %s54_s5, 0 }
  0x69   : > { %5041 = sst [smem:[#allocation33_spill]] %s4415_s8  ;;  %p406_p11 = scmp.eq.s32.totalorder %s4378_s13, 3 }
  0x6a   : > { %p4422_p2 = por %p96_p0, %p71_p7  ;;  %p412_p13 = scmp.eq.s32.totalorder %s3192_s12, 3 }
  0x6b   : > { %s4427_s1 = scalar_select %p55_p10, %s4129_s30, %s57_s23  }
  0x6c   : > { %p4432_p8 = por %p406_p11, %p64_p12  ;;  %p5046_p5 = scmp.ne.s32.totalorder %s4125_s29, %s4121_s28 }
  0x6d   : > { %5043 = sst [smem:[#allocation34_spill]] %s4427_s1  ;;  %s432_s25 = sand.u32 1, %s4129_s30  }
  0x6e   : > { %s5044_s14 = scalar_select %p4432_p8, 1, 0 }
  0x6f   : > { %p4439_p9 = por %p412_p13, %p5046_p5  ;;  %s3196_s19 = sshll.u32 %s4145_s17, 7 }
  0x70   : > { %5045 = sst [smem:[#allocation35_spill]] %s5044_s14  ;;  %s3195_s5 = sshll.u32 %s432_s25, 3 }
  0x71   : > { %s5047_s7 = scalar_select %p4439_p9, 1, 0 }
  0x72   : > { %s5049_s11 = sld [smem:[#allocation37_spill]]  ;;  %s436_s12 = scalar_lea.vmem [#allocation2], %s3195_s5 }
  0x73   : > { %5048 = sst [smem:[#allocation36_spill]] %s5047_s7  ;;  %s443_s23 = sshll.u32 %s436_s12, 4  ;;  %s444_s23 = int_to_ptr.vmem [resolvable:$true] %s443_s23 }
  0x74   : > { %p5050_p7 = scmp.lt.s32.totalorder %s4149_s18, 4  ;;  %s3514_s1 = smul.u32 3, %s4309_s21 }
  0x75   : > { %s3515_s8 = smul.u32 48, %s4141_s16  ;;  %s433_s27 = scalar_lea.sflag [#allocation3], %s432_s25 }
  0x76   : > { %p4452_p12 = pnand %p5050_p7, %p4396_p1  ;;  %s3918_s17 = scalar_lea.vmem %s444_s23, 128 }
  0x77   : > { %p3919_p0 = scmp.ne.s32.totalorder %s444_s23, %s3918_s17  ;;  %s4160_s2 = smov [#allocation2]  }
  0x78   : > { %s441_s15 = scalar_lea.hbm %s5049_s11, %s3196_s19  ;;  %p3907_p13 = pneg %p4452_p12 }
  0x79   : > { %s3923_s9 = sshll.u32 %s4160_s2, 4  ;;  %s3924_s9 = int_to_ptr.vmem [resolvable:$false] %s3923_s9 }
  0x7a   : > { %p3921_p10 = pnand %p3919_p0, %p3907_p13  ;;  %s3925_s11 = scalar_lea.vmem %s3924_s9, 256 }
  0x7b   : > { %p3926_p5 = scmp.lt.s32.totalorder %s444_s23, %s3924_s9  ;;  %p3927_p1 = scmp.lt.s32.totalorder %s3925_s11, %s3918_s17 }
  0x7c   : > { %p3922_p11 = pneg %p3921_p10 }
  0x7d   : > { %p3928_p7 = por %p3927_p1, %p3926_p5 }
  0x7f   : > { %p3929_p9 = pnand %p3928_p7, %p3922_p11 }
  0x81   : > { %3932 = shalt.err (!%p3929_p9)
}
  0x82   : > { %3537 = dma.hbm_to_vmem [thread:$0]  (!%p4452_p12), %s441_s15, 128, %s444_s23, %s433_s27  }
  0x83   : > { %s5052_s19 = sld [smem:[#allocation39_spill]]  ;;  %s475_s12 = scalar_lea.vmem [#allocation7], %s3514_s1 }
  0x84   : > { %s483_s30 = sshll.u32 %s475_s12, 4  ;;  %s3202_s2 = sshll.u32 %s4141_s16, 4  ;;  %s484_s30 = int_to_ptr.vmem [resolvable:$true] %s483_s30 }
  0x85   : > { %s3946_s7 = scalar_lea.vmem %s484_s30, 48  ;;  %s4161_s17 = smov [#allocation7]  }
  0x86   : > { %p3947_p13 = scmp.ne.s32.totalorder %s484_s30, %s3946_s7  ;;  %s3951_s9 = sshll.u32 %s4161_s17, 4  ;;  %s3952_s9 = int_to_ptr.vmem [resolvable:$false] %s3951_s9 }
  0x87   : > { %s3953_s22 = scalar_lea.vmem %s3952_s9, 96  ;;  %p3954_p9 = scmp.lt.s32.totalorder %s484_s30, %s3952_s9 }
  0x88   : > { %p3949_p0 = pnand %p3947_p13, %p4326_p6  ;;  %p3955_p11 = scmp.lt.s32.totalorder %s3953_s22, %s3946_s7 }
  0x89   : > { %s481_s5 = scalar_lea.hbm %s5052_s19, %s3515_s8 }
  0x8a   : > { %p3950_p10 = pneg %p3949_p0  ;;  %p3956_p12 = por %p3955_p11, %p3954_p9 }
  0x8c   : > { %p3957_p5 = pnand %p3956_p12, %p3950_p10 }
  0x8e   : > { %3960 = shalt.err (!%p3957_p5)
}
  0x8f   : > { %s5053_s27 = scalar_lea.sflag [#allocation6], %s4304_s20  ;;  %s5054_s1 = sld [smem:[#allocation45_spill]] }
  0x90   : > { %3543 = dma.hbm_to_vmem [thread:$0]  (!%p4315_p4), %s481_s5, 48, %s484_s30, %s5053_s27  }
  0x91   : > { %s538_s11 = scalar_lea.vmem [#allocation10], %s4309_s21  ;;  %s4162_s7 = smov [#allocation10]  }
  0x92   : > { %s545_s4 = sshll.u32 %s538_s11, 4  ;;  %s3979_s19 = sshll.u32 %s4162_s7, 4  ;;  %s546_s4 = int_to_ptr.vmem [resolvable:$true] %s545_s4  ;;  %s3980_s19 = int_to_ptr.vmem [resolvable:$false] %s3979_s19 }
  0x93   : > { %s3974_s25 = scalar_lea.vmem %s546_s4, 16  ;;  %s3981_s12 = scalar_lea.vmem %s3980_s19, 32 }
  0x94   : > { %p3975_p1 = scmp.ne.s32.totalorder %s546_s4, %s3974_s25  ;;  %p3982_p0 = scmp.lt.s32.totalorder %s546_s4, %s3980_s19 }
  0x95   : > { %s543_s23 = scalar_lea.hbm %s5054_s1, %s3202_s2  ;;  %p3983_p10 = scmp.lt.s32.totalorder %s3981_s12, %s3974_s25 }
  0x96   : > { %p3977_p7 = pnand %p3975_p1, %p4326_p6 }
  0x97   : > { %p3984_p9 = por %p3983_p10, %p3982_p0 }
  0x98   : > { %p3978_p13 = pneg %p3977_p7 }
  0x9a   : > { %p3985_p11 = pnand %p3984_p9, %p3978_p13 }
  0x9c   : > { %3988 = shalt.err (!%p3985_p11)
}
  0x9d   : > { %s5055_s30 = scalar_lea.sflag [#allocation9], %s4304_s20  ;;  %s4002_s21 = scalar_lea.vmem %s4375_s0, 4096 }
  0x9e   : > { %3549 = dma.hbm_to_vmem [thread:$0]  (!%p4315_p4), %s543_s23, 16, %s546_s4, %s5055_s30  }
  0x9f   : > { %p4003_p12 = scmp.ne.s32.totalorder %s4375_s0, %s4002_s21  ;;  %s4163_s5 = smov [#allocation13]  }
  0xa0   : > { %s4007_s2 = sshll.u32 %s4163_s5, 4  ;;  %s4008_s2 = int_to_ptr.vmem [resolvable:$false] %s4007_s2 }
  0xa1   : > { %p4005_p5 = pnand %p4003_p12, %p4326_p6  ;;  %s4009_s17 = scalar_lea.vmem %s4008_s2, 8192 }
  0xa2   : > { %p4010_p7 = scmp.lt.s32.totalorder %s4375_s0, %s4008_s2  ;;  %p4011_p13 = scmp.lt.s32.totalorder %s4009_s17, %s4002_s21 }
  0xa3   : > { %p4006_p1 = pneg %p4005_p5 }
  0xa4   : > { %p4012_p0 = por %p4011_p13, %p4010_p7 }
  0xa6   : > { %p4013_p10 = pnand %p4012_p0, %p4006_p1 }
  0xa8   : > { %4016 = shalt.err (!%p4013_p10)
}
  0xa9   : > { %s5056_s9 = smov 4   ;;  %s5057_s22 = smov 64  }
  0xaa   : > { %s5058_s27 = scalar_lea.sflag [#allocation12], %s4304_s20  ;;  %609 = sbr.rel (%p4341_p3) target bundleno = 2731 (0xaab), region = 72 }
  0xab   : > { %3555 = dma.hbm_to_vmem [thread:$0]  (!%p4315_p4), %s4373_s26, 4096, %s4375_s0, %s5058_s27, %s5057_s22, %s5057_s22, %s5056_s9  }
  0xac   : > { %s4499_s15 = sand.u32 (!%p4341_p3), 1, %s4125_s29   ;;  %p5060_p6 = scmp.ne.s32.totalorder (!%p4341_p3), %s5038_s3, 0 }
  0xad   : > { %s4995_s8 = sshll.u32 (!%p4341_p3), %s4499_s15, 3  ;;  %s612_s24 = scalar_lea.sflag (!%p4341_p3), [#allocation3], %s4499_s15 }
  0xae   : > { %s4505_s1 = scalar_lea.vmem (!%p4341_p3), [#allocation2], %s4995_s8 }
  0xaf   : > { %4088 = dma.done.wait (%p5060_p6), %s612_s24, 128  }
  0xb0   : > { %4090 = vsyncadd (%p5060_p6), %s612_s24, 4294967168  ;;  %s5061_s20 = sld [smem:[#allocation20_spill]]  ;;  %s620_s26 = sand.u32 1, %s4378_s13  }
  0xb1   : > { %s621_s11 = scalar_lea.sflag [#allocation6], %s620_s26 }
  0xb6   : > { %s4513_s0 = sand.u32 1, %s5061_s20  }
  0xb7   : > { %s3516_s23 = smul.u32 192, %s4513_s0 }
  0xb9   : > { %s4516_s4 = scalar_lea.vmem [#allocation5], %s3516_s23 }
  0xba   : > { %4092 = dma.done.wait (%p4422_p2), %s621_s11, 3120  }
  0xbb   : > { %4094 = vsyncadd (%p4422_p2), %s621_s11, 4294964176  ;;  %s3517_s3 = smul.u32 3, %s4513_s0  ;;  %s3211_s25 = sshll.u32 %s4513_s0, 6 }
  0xbc   : > { %s639_s13 = scalar_lea.sflag [#allocation9], %s620_s26  ;;  %s4526_s19 = scalar_lea.vmem [#allocation8], %s3211_s25 }
  0xbd   : > { %s4524_s7 = scalar_lea.vmem [#allocation7], %s3517_s3 }
  0xbe   : > { %4096 = dma.done.wait (%p4422_p2), %s639_s13, 1040  }
  0xbf   : > { %4098 = vsyncadd (%p4422_p2), %s639_s13, 4294966256  ;;  %s3212_s12 = sshll.u32 %s4513_s0, 8  ;;  %s656_s21 = scalar_lea.sflag [#allocation12], %s620_s26 }
  0xc0   : > { %s4534_s5 = scalar_lea.vmem [#allocation11], %s3212_s12 }
  0xc1   : > { %4100 = dma.done.wait (%p4422_p2), %s656_s21, 8192  }
  0xc2   : > { %4102 = vsyncadd (%p4422_p2), %s656_s21, 4294959104  ;;  %s5062_s2 = sld [smem:[#allocation25_spill]]  ;;  %s4570_s24 = scalar_lea.vmem [#allocation13], %s3212_s12 }
  0xc3   : > { %s5064_s10 = sld [smem:[#allocation42_spill]]  ;;  %s5069_s20 = sshll.u32 %s4499_s15, 3 }
  0xc4   : > { %s5065_s3 = sld [smem:[#allocation43_spill]] }
  0xc5   : > { %s5066_s30 = sld [smem:[#allocation44_spill]] }
  0xc6   : > { %s5067_s29 = sld [smem:[#allocation49_spill]] }
  0xc7   : > { %s5068_s27 = sld [smem:[#allocation47_spill]] }
  0xc8   : > { %p759_p4 = scmp.lt.s32.totalorder %s5062_s2, 1  ;;  %p3216_p2 = scmp.ne.s32.totalorder %s5062_s2, 0 }
  0xca   : > { %s4542_s17 = scalar_select %p759_p4, %s5062_s2, 1 }
  0xcb   : > { %782 = sbr.rel (%p3216_p2) target bundleno = 210 (0xd2), region = 104 }
  0xcc   : > { %s764_s26 = scalar_lea.vmem %s5064_s10, %s4542_s17  ;;  %s767_s25 = scalar_lea.vmem %s5065_s3, %s4542_s17 }
  0xcd   : > { %s770_s8 = scalar_lea.vmem %s5066_s30, %s4542_s17  ;;  %s3215_s16 = sshll.u32 %s4542_s17, 2 }
  0xce   : > { %s777_s28 = scalar_lea.vmem %s5067_s29, %s4542_s17  ;;  %s4568_s6 = scalar_lea.vmem %s5068_s27, %s3215_s16 }
  0xcf   : > { %s4574_s10 = scalar_lea.vmem [#allocation14], %s5069_s20 }
  0xd0   : > { %v783_v0 = vld [vmem:[%s4505_s1] sm:$0xff] }
  0xd1   : > { %784 = vst [vmem:[%s4574_s10] sm:$0xff] %v783_v0 }
  0xd2 PF: > { %v3664_v2 = vld [vmem:[%s4516_s4 + $0xac] ss:$12 sps:$4 sm:$0xff]   ;;  %v3666_v3 = vld [vmem:[%s4516_s4 + $0xa8] ss:$12 sps:$4 sm:$0xff]   ;;  %v4164_v4 = vmov 0.0   ;;  %v4165_v23 = vmov 0   ;;  %v849_v42 = vlaneseq }
  0xd3   : > { %3424 = vmatprep.subr.bf16.mxu1 %v4164_v4  ;;  %v3667_v5 = vld [vmem:[%s4516_s4 + $0xb0] ss:$12 sps:$4 sm:$0xff]   ;;  %v3668_v6 = vld [vmem:[%s4516_s4 + $0x94] ss:$12 sps:$4 sm:$0xff]   ;;  %992 = vmatprep.subr.bf16.mxu0 %v3664_v2  ;;  %v3671_v8 = vld [vmem:[%s4516_s4 + $0x98] ss:$12 sps:$4 sm:$0xff]  }
  0xd4   : > { %v3670_v7 = vld [vmem:[%s4516_s4 + $0x90] ss:$12 sps:$4 sm:$0xff]   ;;  %993 = vmatpush1.bf16.msra.mxu0 %v3666_v3  ;;  %3425 = vmatpush3.bf16.msra.mxu1 %v3667_v5  ;;  %v3674_v14 = vld [vmem:[%s4516_s4 + $0x78] ss:$12 sps:$4 sm:$0xff]   ;;  %v3675_v15 = vld [vmem:[%s4516_s4 + $0x80] ss:$12 sps:$4 sm:$0xff]  }
  0xd5   : > { %994 = vmatprep.subr.bf16.mxu0 %v3668_v6  ;;  %3426 = vmatprep.subr.bf16.mxu1 %v4164_v4  ;;  %v3672_v13 = vld [vmem:[%s4516_s4 + $0x7c] ss:$12 sps:$4 sm:$0xff]   ;;  %v3676_v16 = vld [vmem:[%s4516_s4 + $0x64] ss:$12 sps:$4 sm:$0xff]   ;;  %v3678_v17 = vld [vmem:[%s4516_s4 + $0x60] ss:$12 sps:$4 sm:$0xff]  }
  0xd6   : > { %v3679_v18 = vld [vmem:[%s4516_s4 + $0x68] ss:$12 sps:$4 sm:$0xff]   ;;  %v3680_v19 = vld [vmem:[%s4516_s4 + $0x4c] ss:$12 sps:$4 sm:$0xff]   ;;  %v3683_v21 = vld [vmem:[%s4516_s4 + $0x50] ss:$12 sps:$4 sm:$0xff]   ;;  %1024 = vmatprep.mubr.bf16.mxu0 %v4165_v23 }
  0xd7   : > { %v3682_v20 = vld [vmem:[%s4516_s4 + $0x48] ss:$12 sps:$4 sm:$0xff]   ;;  %vm4166_vm0 = vmmov 0   ;;  %v3686_v24 = vld [vmem:[%s4516_s4 + $0x30] ss:$12 sps:$4 sm:$0xff]   ;;  %v4631_v43 = vshrl.u32 %v849_v42, 7 }
  0xd8   : > { %v785_v1 = vld [vmem:[%s4574_s10] sm:$0xff]  ;;  %995 = vmatpush1.bf16.msra.mxu0 %v3670_v7  ;;  %3427 = vmatpush3.bf16.msra.mxu1 %v3671_v8  ;;  %v3687_v25 = vld [vmem:[%s4516_s4 + $0x38] ss:$12 sps:$4 sm:$0xff]   ;;  %s4167_s12 = smov 32   ;;  %s4168_s30 = smov 96   ;;  %vm1519_vm1 = vcmask 261120  }
  0xd9   : > { %786 = vadd.xlane.f32.xlu0 %v785_v1  ;;  %3428 = vmatprep.subr.bf16.mxu1 %v4164_v4  ;;  %v3684_v22 = vld [vmem:[%s4516_s4 + $0x34] ss:$12 sps:$4 sm:$0xff]   ;;  %v3688_v26 = vld [vmem:[%s4516_s4 + $0x1c] ss:$12 sps:$4 sm:$0xff]   ;;  %v3690_v27 = vld [vmem:[%s4516_s4 + $0x18] ss:$12 sps:$4 sm:$0xff]  }
  0xda   : > { %996 = vmatprep.subr.bf16.mxu0 %v3672_v13  ;;  %3440 = vmatprep.mubr.msk.bf16.mxu1 %vm4166_vm0, %v4164_v4  ;;  %v3691_v28 = vld [vmem:[%s4516_s4 + $0x20] ss:$12 sps:$4 sm:$0xff]   ;;  %v3692_v29 = vld [vmem:[%s4516_s4 + $0x4] ss:$12 sps:$4 sm:$0xff]   ;;  %v3695_v31 = vld [vmem:[%s4516_s4 + $0x8] ss:$12 sps:$4 sm:$0xff]  }
  0xdb   : > { %v3694_v30 = vld [vmem:[%s4516_s4] ss:$12 sps:$4 sm:$0xff]   ;;  %v3217_v36 = vld [vmem:[%s764_s26] ss:$0 sm:$0xff]  ;;  %v855_v44 = vsub.s32 1, %v4631_v43  ;;  %v851_v51 = vsub.s32 0, %v4631_v43 }
  0xdc   : > { %997 = vmatpush1.bf16.msra.mxu0 %v3674_v14  ;;  %3429 = vmatpush3.bf16.msra.mxu1 %v3675_v15  ;;  %v3218_v38 = vld [vmem:[%s767_s25] ss:$0 sm:$0xff]  ;;  %v4635_v45 = vld [vmem:[%s4524_s7] sm:$0x7]  ;;  %s4169_s7 = smov 64   ;;  %vm1704_vm2 = vcmask 64512  }
  0xdd   : > { %3430 = vmatprep.subr.bf16.mxu1 %v4164_v4  ;;  %998 = vmatprep.subr.bf16.mxu0 %v3676_v16  ;;  %v856_v46 = vrot.slane %v4635_v45, %v855_v44  ;;  %v852_v57 = vrot.slane %v4635_v45, %v851_v51  ;;  %v4170_v59 = vmov 1983009808   ;;  %v4171_v61 = vmov 1934713408   ;;  %s5072_s26 = sld [smem:[#allocation41_spill]]  ;;  %s2927_s22 = sshll.u32 %s4574_s10, 4  ;;  %s2928_s22 = int_to_ptr.vmem [resolvable:$true] %s2927_s22 }
  0xde   : > { %v1086_v60 = vunpack.c.l.s4 %v4170_v59  ;;  %v1118_v62 = vunpack.c.l.s4 %v4171_v61  ;;  %vm1760_vm3 = vcmask 1043456   ;;  %vm2091_vm4 = vcmask 523264   ;;  %s2914_s29 = scalar_lea.sflag [#allocation4], %s4499_s15  ;;  %s4017_s16 = scalar_lea.vmem %s2928_s22, 128 }
  0xdf   : > { %vm2093_vm5 = vcmask 785408   ;;  %p4018_p3 = scmp.ne.s32.totalorder %s2928_s22, %s4017_s16  ;;  %s4172_s18 = smov [#allocation14]  }
  0xe0   : > { %999 = vmatpush1.bf16.msra.mxu0 %v3678_v17  ;;  %3431 = vmatpush3.bf16.msra.mxu1 %v3679_v18  ;;  %v1087_v63 = vunpack.c.0.s8 %v1086_v60  ;;  %v1119_v2 = vunpack.c.0.s8 %v1118_v62  ;;  %s4021_s14 = sshll.u32 %s4172_s18, 4  ;;  %s4022_s14 = int_to_ptr.vmem [resolvable:$false] %s4021_s14 }
  0xe1   : > { %1000 = vmatprep.subr.bf16.mxu0 %v3680_v19  ;;  %3432 = vmatprep.subr.bf16.mxu1 %v4164_v4  ;;  %p4019_p9 = pnand %p4018_p3, %p4432_p8  ;;  %s4023_s1 = scalar_lea.vmem %s4022_s14, 256 }
  0xe2   : > { %v4653_v3 = vsub.s32 %v1087_v63, %v4631_v43  ;;  %p4024_p12 = scmp.lt.s32.totalorder %s2928_s22, %s4022_s14  ;;  %p4025_p5 = scmp.lt.s32.totalorder %s4023_s1, %s4017_s16 }
  0xe3   : > { %s5073_s23 = scalar_lea.vmem %s5072_s26, %s4542_s17  ;;  %p4020_p11 = pneg %p4019_p9 }
  0xe4   : > { %1001 = vmatpush1.bf16.msra.mxu0 %v3682_v20  ;;  %3433 = vmatpush3.bf16.msra.mxu1 %v3683_v21  ;;  %p4026_p1 = por %p4025_p5, %p4024_p12 }
  0xe5   : > { %1002 = vmatprep.subr.bf16.mxu0 %v3684_v22  ;;  %3434 = vmatprep.subr.bf16.mxu1 %v4164_v4 }
  0xe6   : > { %p4027_p7 = pnand %p4026_p1, %p4020_p11 }
  0xe8   : > { %1003 = vmatpush1.bf16.msra.mxu0 %v3686_v24  ;;  %3435 = vmatpush3.bf16.msra.mxu1 %v3687_v25 }
  0xe9   : > { %1004 = vmatprep.subr.bf16.mxu0 %v3688_v26  ;;  %3436 = vmatprep.subr.bf16.mxu1 %v4164_v4 }
  0xec   : > { %1005 = vmatpush1.bf16.msra.mxu0 %v3690_v27  ;;  %3437 = vmatpush3.bf16.msra.mxu1 %v3691_v28 }
  0xed   : > { %1006 = vmatprep.subr.bf16.mxu0 %v3692_v29  ;;  %3438 = vmatprep.subr.bf16.mxu1 %v4164_v4 }
  0xf0   : > { %1007 = vmatpush1.bf16.msra.mxu0 %v3694_v30  ;;  %3439 = vmatpush3.bf16.msra.mxu1 %v3695_v31 }
  0xf1   : > { %3444 = vmatprep.subr.bf16.mxu1 %v4164_v4  ;;  %3468 = vmatprep.subr.bf16.mxu0 %v4164_v4 }
 0x162   : > { %v787_v9 = vpop.xlane.xlu0 %786 }
 0x163   : > { %v789_v10 = vmul.f32 0.0078125, %v787_v9 }
 0x165   : > { %v790_v11 = vsub.f32 %v785_v1, %v789_v10  ;;  %v4656_v10 = vsub.s32 %v1119_v2, %v4631_v43 }
 0x167   : > { %v791_v12 = vmul.f32 %v790_v11, %v790_v11 }
 0x169   : > { %792 = vadd.xlane.f32.xlu0 %v791_v12 }
 0x1f2   : > { %v793_v32 = vpop.xlane.xlu0 %792 }
 0x1f3   : > { %v794_v33 = vmul.f32 0.0078125, %v793_v32 }
 0x1f5   : > { %v795_v34 = vadd.f32 1e-05, %v794_v33 }
 0x1f7   : > { %3784 = vrsqrt.f32 %v795_v34 }
 0x204   : > { %v3785_v35 = vpop.eup %3784 }
 0x205   : > { %v797_v37 = vmul.f32 %v3785_v35, %v790_v11 }
 0x207   : > { %v805_v39 = vmul.f32 %v3217_v36, %v797_v37 }
 0x209   : > { %v813_v40 = vadd.f32 %v3218_v38, %v805_v39 }
 0x20b   : > { %v814_v41 = vpack.c.bf16 %v813_v40, %v813_v40 }
 0x20d   : > { %1025 = vmatmul.mubr.bf16.vlgmr.msra.gmra.mxu0 %v814_v41  ;;  %3441 = vmatmul.mubr.bf16.vlgmr.msra.gmra.mxu1 %v814_v41 }
 0x20e   : > { %3446 = vmatprep.mubr.msk.bf16.mxu1 %vm4166_vm0, %v4164_v4  ;;  %3470 = vmatprep.mubr.msk.bf16.mxu0 %vm4166_vm0, %v4164_v4 }
 0x2cd   : > { %v1026_v47 = vpop.f32.mrf.mxu0  ;;  %v4640_v48 = vpop.f32.mrf.mxu1 }
 0x2ce   : > { %v1027_v58 = vadd.f32 %v1026_v47, %v852_v57 }
 0x2cf   : > { %v1028_v49 = vpop.f32.mrf.mxu0  ;;  %v3442_v50 = vpop.f32.mrf.mxu1 }
 0x2d0   : > { %v1029_v52 = vadd.f32 %v1028_v49, %v856_v46 }
 0x2d1   : > { %v1030_v53 = vpop.f32.mrf.mxu0  ;;  %v1070_v54 = vpop.f32.mrf.mxu1 }
 0x2d2   : > { %1226 = vrot.lane.b32.xlu0 %v1029_v52, %s4167_s12  ;;  %1220 = vrot.lane.b32.xlu1 %v1029_v52, %s4168_s30 }
 0x2d3   : > { %v1031_v55 = vpop.f32.mrf.mxu0  ;;  %v3443_v56 = vpop.f32.mrf.mxu1 }
 0x2d6   : > { %1223 = vrot.lane.b32.xlu1 %v1029_v52, %s4169_s7 }
 0x2da   : > { %1074 = vrot.lane.b32.xlu1 %v1027_v58, %s4168_s30 }
 0x2de   : > { %1077 = vrot.lane.b32.xlu1 %v1027_v58, %s4169_s7 }
 0x2e2   : > { %1080 = vrot.lane.b32.xlu1 %v1027_v58, %s4167_s12 }
 0x344   : > { %v1227_v0 = vpop.permute.xlu0 %1226  ;;  %v1221_v1 = vpop.permute.xlu1 %1220 }
 0x345   : > { %v1245_v5 = vcombine.low %v1221_v1, %v1227_v0  ;;  %v1246_v6 = vcombine.high %v1221_v1, %v1227_v0 }
 0x347   : > { %v1253_v11 = vrot.slane %v1245_v5, %v4653_v3  ;;  %v1260_v12 = vrot.slane %v1246_v6, %v4653_v3 }
 0x348   : > { %v1224_v7 = vpop.permute.xlu1 %1223 }
 0x349   : > { %v1229_v8 = vcombine.low %v1029_v52, %v1224_v7  ;;  %v1230_v9 = vcombine.high %v1029_v52, %v1224_v7 }
 0x34b   : > { %v1237_v13 = vrot.slane %v1229_v8, %v4653_v3  ;;  %v1244_v14 = vrot.slane %v1230_v9, %v4653_v3 }
 0x34c   : > { %v1075_v15 = vpop.permute.xlu1 %1074 }
 0x34d   : > { %v1261_v16 = vcombine.low %v1237_v13, %v1253_v11  ;;  %v1262_v17 = vcombine.high %v1237_v13, %v1253_v11  ;;  %v1277_v18 = vcombine.low %v1244_v14, %v1260_v12  ;;  %v1278_v19 = vcombine.high %v1244_v14, %v1260_v12 }
 0x34f   : > { %v1269_v20 = vrot.slane %v1261_v16, %v4656_v10  ;;  %v1276_v21 = vrot.slane %v1262_v17, %v4656_v10  ;;  %v1285_v22 = vrot.slane %v1277_v18, %v4656_v10  ;;  %v1292_v24 = vrot.slane %v1278_v19, %v4656_v10 }
 0x350   : > { %v1078_v25 = vpop.permute.xlu1 %1077 }
 0x351   : > { %v1297_v26 = vcombine.low %v1269_v20, %v1276_v21  ;;  %v3245_v27 = vcombine.high %v1269_v20, %v1276_v21  ;;  %v1313_v28 = vcombine.low %v1285_v22, %v1292_v24  ;;  %v3246_v29 = vcombine.high %v1285_v22, %v1292_v24 }
 0x352   : > { %v1083_v30 = vcombine.low %v1027_v58, %v1078_v25  ;;  %v1084_v31 = vcombine.high %v1027_v58, %v1078_v25 }
 0x353   : > { %v1304_v32 = vrot.slane %v1297_v26, %v4653_v3  ;;  %v1312_v33 = vrot.slane %v3245_v27, %v4653_v3  ;;  %v1320_v34 = vrot.slane %v1313_v28, %v4653_v3  ;;  %v1328_v35 = vrot.slane %v3246_v29, %v4653_v3 }
 0x354   : > { %v1081_v36 = vpop.permute.xlu1 %1080  ;;  %v1091_v41 = vrot.slane %v1083_v30, %v4653_v3  ;;  %v1098_v42 = vrot.slane %v1084_v31, %v4653_v3 }
 0x355   : > { %v1099_v37 = vcombine.low %v1075_v15, %v1081_v36  ;;  %v1100_v38 = vcombine.high %v1075_v15, %v1081_v36  ;;  %v1329_v39 = vcombine.low %v1304_v32, %v1312_v33  ;;  %v1345_v40 = vcombine.low %v1320_v34, %v1328_v35 }
 0x356   : > { %v1330_v9 = vcombine.high %v1304_v32, %v1312_v33  ;;  %v1346_v14 = vcombine.high %v1320_v34, %v1328_v35 }
 0x357   : > { %v1107_v46 = vrot.slane %v1099_v37, %v4653_v3  ;;  %v1114_v47 = vrot.slane %v1100_v38, %v4653_v3  ;;  %v1337_v49 = vrot.slane %v1329_v39, %v4656_v10  ;;  %v1353_v50 = vrot.slane %v1345_v40, %v4656_v10 }
 0x358   : > { %v1344_v19 = vrot.slane %v1330_v9, %v4656_v10  ;;  %v1360_v20 = vrot.slane %v1346_v14, %v4656_v10 }
 0x359   : > { %v1115_v52 = vcombine.low %v1091_v41, %v1107_v46  ;;  %v1116_v53 = vcombine.high %v1091_v41, %v1107_v46  ;;  %v1131_v54 = vcombine.low %v1098_v42, %v1114_v47  ;;  %v1132_v55 = vcombine.high %v1098_v42, %v1114_v47 }
 0x35a   : > { %v1361_v56 = vcombine.low %v1337_v49, %v1353_v50  ;;  %v1362_v13 = vcombine.high %v1337_v49, %v1353_v50  ;;  %v1363_v24 = vcombine.low %v1344_v19, %v1360_v20  ;;  %v1364_v33 = vcombine.high %v1344_v19, %v1360_v20 }
 0x35b   : > { %v1123_v57 = vrot.slane %v1115_v52, %v4656_v10  ;;  %v1130_v58 = vrot.slane %v1116_v53, %v4656_v10  ;;  %v1139_v59 = vrot.slane %v1131_v54, %v4656_v10  ;;  %v1146_v60 = vrot.slane %v1132_v55, %v4656_v10 }
 0x35c   : > { %v1515_v61 = vpack.c.bf16 %v1361_v56, %v1361_v56  ;;  %v1516_v18 = vpack.c.bf16 %v1362_v13, %v1362_v13  ;;  %v1517_v28 = vpack.c.bf16 %v1363_v24, %v1363_v24  ;;  %v1518_v35 = vpack.c.bf16 %v1364_v33, %v1364_v33 }
 0x35d   : > { %v1151_v62 = vcombine.low %v1123_v57, %v1130_v58  ;;  %v3243_v63 = vcombine.high %v1123_v57, %v1130_v58  ;;  %v1167_v0 = vcombine.low %v1139_v59, %v1146_v60  ;;  %v3244_v1 = vcombine.high %v1139_v59, %v1146_v60 }
 0x35e   : > { %v1524_v2 = vsel %vm1519_vm1, %v1515_v61, 0  ;;  %v1570_v22 = vsel %vm1519_vm1, %v1516_v18, 0  ;;  %v1616_v32 = vsel %vm1519_vm1, %v1517_v28, 0  ;;  %v1662_v37 = vsel %vm1519_vm1, %v1518_v35, 0 }
 0x35f   : > { %v1158_v5 = vrot.slane %v1151_v62, %v4653_v3  ;;  %v1166_v6 = vrot.slane %v3243_v63, %v4653_v3  ;;  %v1174_v7 = vrot.slane %v1167_v0, %v4653_v3  ;;  %v1182_v8 = vrot.slane %v3244_v1, %v4653_v3  ;;  %3445 = vmatpush3.bf16.xpose.msra.mxu1 %v1524_v2 }
 0x360   : > { %3450 = vmatprep.subr.bf16.mxu1 %v4164_v4  ;;  %v859_v1 = vsub.s32 2, %v4631_v43 }
 0x361   : > { %v1183_v11 = vcombine.low %v1158_v5, %v1166_v6  ;;  %v1199_v12 = vcombine.low %v1174_v7, %v1182_v8  ;;  %v1184_v25 = vcombine.high %v1158_v5, %v1166_v6  ;;  %v1200_v26 = vcombine.high %v1174_v7, %v1182_v8 }
 0x362   : > { %v860_v2 = vrot.slane %v4635_v45, %v859_v1 }
 0x363   : > { %v1191_v15 = vrot.slane %v1183_v11, %v4656_v10  ;;  %v1207_v16 = vrot.slane %v1199_v12, %v4656_v10  ;;  %v1198_v30 = vrot.slane %v1184_v25, %v4656_v10  ;;  %v1214_v31 = vrot.slane %v1200_v26, %v4656_v10 }
 0x364   : > { %v1068_v5 = vadd.f32 %v4640_v48, %v860_v2 }
 0x365   : > { %v1215_v17 = vcombine.low %v1191_v15, %v1207_v16  ;;  %v1216_v27 = vcombine.high %v1191_v15, %v1207_v16  ;;  %v1217_v34 = vcombine.low %v1198_v30, %v1214_v31  ;;  %v1218_v38 = vcombine.high %v1198_v30, %v1214_v31 }
 0x367   : > { %v1511_v21 = vpack.c.bf16 %v1215_v17, %v1215_v17  ;;  %v1512_v29 = vpack.c.bf16 %v1216_v27, %v1216_v27  ;;  %v1513_v36 = vpack.c.bf16 %v1217_v34, %v1217_v34  ;;  %v1514_v39 = vpack.c.bf16 %v1218_v38, %v1218_v38 }
 0x369   : > { %3447 = vmatmul.mubr.msk.bf16.vlgmr.msra.gmra.mxu1 %vm1519_vm1, %v1511_v21 }
 0x36a   : > { %3451 = vmatpush3.bf16.xpose.msra.mxu1 %v1570_v22  ;;  %3452 = vmatprep.mubr.msk.bf16.mxu1 %vm4166_vm0, %v4164_v4 }
 0x36b   : > { %3456 = vmatprep.subr.bf16.mxu1 %v4164_v4 }
 0x371   : > { %3453 = vmatmul.mubr.msk.bf16.vlgmr.msra.gmra.mxu1 %vm1519_vm1, %v1512_v29 }
 0x372   : > { %3457 = vmatpush3.bf16.xpose.msra.mxu1 %v1616_v32  ;;  %3458 = vmatprep.mubr.msk.bf16.mxu1 %vm4166_vm0, %v4164_v4 }
 0x373   : > { %3462 = vmatprep.subr.bf16.mxu1 %v4164_v4 }
 0x379   : > { %3459 = vmatmul.mubr.msk.bf16.vlgmr.msra.gmra.mxu1 %vm1519_vm1, %v1513_v36 }
 0x37a   : > { %3463 = vmatpush3.bf16.xpose.msra.mxu1 %v1662_v37  ;;  %3464 = vmatprep.mubr.msk.bf16.mxu1 %vm4166_vm0, %v4164_v4 }
 0x37b   : > { %3474 = vmatprep.subr.bf16.mxu1 %v4164_v4 }
 0x381   : > { %3465 = vmatmul.mubr.msk.bf16.vlgmr.msra.gmra.mxu1 %vm1519_vm1, %v1514_v39 }
 0x382   : > { %3476 = vmatprep.mubr.msk.bf16.mxu1 %vm4166_vm0, %v4164_v4 }
 0x429   : > { %v1560_v40 = vpop.f32.mrf.mxu1 }
 0x42a   : > { %v1705_v41 = vsel %vm1704_vm2, %v1560_v40, -inf }
 0x42b   : > { %1706 = vmax.xlane.f32.xlu1 %v1705_v41  ;;  %v3448_v42 = vpop.f32.mrf.mxu1 }
 0x42d   : > { %v1563_v46 = vpop.f32.mrf.mxu1 }
 0x42f   : > { %v3449_v47 = vpop.f32.mrf.mxu1 }
 0x431   : > { %v1606_v49 = vpop.f32.mrf.mxu1 }
 0x432   : > { %v1708_v50 = vsel %vm1704_vm2, %v1606_v49, -inf }
 0x433   : > { %1709 = vmax.xlane.f32.xlu0 %v1708_v50  ;;  %v3454_v52 = vpop.f32.mrf.mxu1 }
 0x435   : > { %v1609_v53 = vpop.f32.mrf.mxu1 }
 0x437   : > { %v3455_v54 = vpop.f32.mrf.mxu1 }
 0x439   : > { %v1652_v55 = vpop.f32.mrf.mxu1 }
 0x43a   : > { %v1711_v56 = vsel %vm1704_vm2, %v1652_v55, -inf }
 0x43b   : > { %1712 = vmax.xlane.f32.xlu1 %v1711_v56  ;;  %v3460_v57 = vpop.f32.mrf.mxu1 }
 0x43d   : > { %v1655_v58 = vpop.f32.mrf.mxu1 }
 0x43f   : > { %v3461_v59 = vpop.f32.mrf.mxu1 }
 0x441   : > { %v1698_v60 = vpop.f32.mrf.mxu1 }
 0x442   : > { %v1714_v61 = vsel %vm1704_vm2, %v1698_v60, -inf }
 0x443   : > { %1715 = vmax.xlane.f32.xlu1 %v1714_v61  ;;  %v3466_v62 = vpop.f32.mrf.mxu1 }
 0x445   : > { %v1701_v63 = vpop.f32.mrf.mxu1 }
 0x447   : > { %v3467_v0 = vpop.f32.mrf.mxu1 }
 0x454   : > { %1369 = vrot.lane.b32.xlu1 %v1068_v5, %s4169_s7 }
 0x4b4   : > { %v1707_v6 = vpop.xlane.xlu1 %1706 }
 0x4b5   : > { %v1717_v7 = vsub.f32 %v1560_v40, %v1707_v6 }
 0x4b7   : > { %v1721_v8 = vmul.f32 1.442695, %v1717_v7 }
 0x4b9   : > { %3786 = vpow2.f32 %v1721_v8 }
 0x4bc   : > { %v1710_v9 = vpop.xlane.xlu0 %1709 }
 0x4bd   : > { %v1718_v11 = vsub.f32 %v1606_v49, %v1710_v9 }
 0x4bf   : > { %v1723_v12 = vmul.f32 1.442695, %v1718_v11 }
 0x4c1   : > { %3788 = vpow2.f32 %v1723_v12 }
 0x4c4   : > { %v1713_v48 = vpop.xlane.xlu1 %1712 }
 0x4c5   : > { %v1719_v16 = vsub.f32 %v1652_v55, %v1713_v48 }
 0x4c6   : > { %v4720_v13 = vpop.eup %3786 }
 0x4c7   : > { %v1729_v14 = vsel %vm1704_vm2, %v4720_v13, 0.0  ;;  %v1725_v17 = vmul.f32 1.442695, %v1719_v16 }
 0x4c8   : > { %1730 = vadd.xlane.f32.xlu0 %v1729_v14 }
 0x4c9   : > { %3790 = vpow2.f32 %v1725_v17 }
 0x4cc   : > { %v1716_v18 = vpop.xlane.xlu1 %1715 }
 0x4cd   : > { %v1720_v19 = vsub.f32 %v1698_v60, %v1716_v18 }
 0x4ce   : > { %v4724_v15 = vpop.eup %3788 }
 0x4cf   : > { %v1732_v45 = vsel %vm1704_vm2, %v4724_v15, 0.0  ;;  %v1727_v20 = vmul.f32 1.442695, %v1720_v19 }
 0x4d0   : > { %1733 = vadd.xlane.f32.xlu1 %v1732_v45  ;;  %v1370_v26 = vpop.permute.xlu1 %1369 }
 0x4d1   : > { %3792 = vpow2.f32 %v1727_v20  ;;  %v1375_v29 = vcombine.low %v1068_v5, %v1370_v26  ;;  %v1376_v30 = vcombine.high %v1068_v5, %v1370_v26 }
 0x4d3   : > { %v1383_v35 = vrot.slane %v1375_v29, %v4653_v3  ;;  %v1390_v36 = vrot.slane %v1376_v30, %v4653_v3 }
 0x4d6   : > { %v4730_v21 = vpop.eup %3790 }
 0x4d7   : > { %v1735_v22 = vsel %vm1704_vm2, %v4730_v21, 0.0 }
 0x4de   : > { %1366 = vrot.lane.b32.xlu0 %v1068_v5, %s4168_s30  ;;  %v4734_v24 = vpop.eup %3792 }
 0x4df   : > { %v1738_v25 = vsel %vm1704_vm2, %v4734_v24, 0.0 }
 0x4e1   : > { %1372 = vrot.lane.b32.xlu1 %v1068_v5, %s4167_s12 }
 0x4fd   : > { %1736 = vadd.xlane.f32.xlu0 %v1735_v22 }
 0x505   : > { %1739 = vadd.xlane.f32.xlu1 %v1738_v25 }
 0x551   : > { %v1731_v27 = vpop.xlane.xlu0 %1730 }
 0x552   : > { %3794 = vrcp.f32 %v1731_v27 }
 0x555   : > { %v1367_v31 = vpop.permute.xlu0 %1366 }
 0x559   : > { %v1734_v28 = vpop.xlane.xlu1 %1733 }
 0x55a   : > { %3796 = vrcp.f32 %v1734_v28 }
 0x55d   : > { %v1373_v32 = vpop.permute.xlu1 %1372 }
 0x55e   : > { %v1391_v33 = vcombine.low %v1367_v31, %v1373_v32  ;;  %v1392_v34 = vcombine.high %v1367_v31, %v1373_v32 }
 0x55f   : > { %v3795_v0 = vpop.eup %3794 }
 0x560   : > { %v1399_v37 = vrot.slane %v1391_v33, %v4653_v3  ;;  %v1406_v38 = vrot.slane %v1392_v34, %v4653_v3  ;;  %v1745_v16 = vmul.f32 %v3795_v0, %v4720_v13 }
 0x562   : > { %v1407_v39 = vcombine.low %v1383_v35, %v1399_v37  ;;  %v1408_v40 = vcombine.high %v1383_v35, %v1399_v37  ;;  %v1423_v41 = vcombine.low %v1390_v36, %v1406_v38  ;;  %v1424_v42 = vcombine.high %v1390_v36, %v1406_v38  ;;  %v3696_v35 = vld [vmem:[%s4526_s19 + $0x38] sm:$0xff]   ;;  %v3698_v36 = vld [vmem:[%s4526_s19 + $0x28] sm:$0xff]   ;;  %v3699_v37 = vld [vmem:[%s4526_s19 + $0x20] sm:$0xff]  }
 0x563   : > { %v1749_v25 = vpack.c.bf16 %v1745_v16, %v1745_v16  ;;  %v3701_v38 = vld [vmem:[%s4526_s19 + $0x10] sm:$0xff]  }
 0x564   : > { %v1415_v46 = vrot.slane %v1407_v39, %v4656_v10  ;;  %v1422_v47 = vrot.slane %v1408_v40, %v4656_v10  ;;  %v1431_v49 = vrot.slane %v1423_v41, %v4656_v10  ;;  %v1438_v50 = vrot.slane %v1424_v42, %v4656_v10 }
 0x566   : > { %v1443_v52 = vcombine.low %v1415_v46, %v1422_v47  ;;  %v3247_v53 = vcombine.high %v1415_v46, %v1422_v47  ;;  %v1459_v54 = vcombine.low %v1431_v49, %v1438_v50  ;;  %v3248_v55 = vcombine.high %v1431_v49, %v1438_v50 }
 0x567   : > { %v3797_v8 = vpop.eup %3796 }
 0x568   : > { %v1450_v56 = vrot.slane %v1443_v52, %v4653_v3  ;;  %v1458_v57 = vrot.slane %v3247_v53, %v4653_v3  ;;  %v1466_v58 = vrot.slane %v1459_v54, %v4653_v3  ;;  %v1474_v59 = vrot.slane %v3248_v55, %v4653_v3 }
 0x569   : > { %v1746_v17 = vmul.f32 %v3797_v8, %v4724_v15 }
 0x56a   : > { %v1475_v60 = vcombine.low %v1450_v56, %v1458_v57  ;;  %v1491_v61 = vcombine.low %v1466_v58, %v1474_v59  ;;  %v1476_v62 = vcombine.high %v1450_v56, %v1458_v57  ;;  %v1492_v63 = vcombine.high %v1466_v58, %v1474_v59 }
 0x56b   : > { %v1750_v26 = vpack.c.bf16 %v1746_v17, %v1746_v17 }
 0x56c   : > { %v1483_v2 = vrot.slane %v1475_v60, %v4656_v10  ;;  %v1499_v5 = vrot.slane %v1491_v61, %v4656_v10  ;;  %v1490_v6 = vrot.slane %v1476_v62, %v4656_v10  ;;  %v1506_v7 = vrot.slane %v1492_v63, %v4656_v10 }
 0x56e   : > { %v1507_v9 = vcombine.low %v1483_v2, %v1499_v5  ;;  %v1508_v11 = vcombine.high %v1483_v2, %v1499_v5  ;;  %v1509_v12 = vcombine.low %v1490_v6, %v1506_v7  ;;  %v1510_v14 = vcombine.high %v1490_v6, %v1506_v7 }
 0x570   : > { %v1753_v45 = vpack.c.bf16 %v1507_v9, %v1507_v9  ;;  %v1754_v48 = vpack.c.bf16 %v1508_v11, %v1508_v11  ;;  %v1755_v20 = vpack.c.bf16 %v1509_v12, %v1509_v12  ;;  %v1756_v22 = vpack.c.bf16 %v1510_v14, %v1510_v14  ;;  %v3702_v11 = vld [vmem:[%s4526_s19 + $0x8] sm:$0xff]  }
 0x572   : > { %v1762_v18 = vsel %vm1760_vm3, %v1753_v45, 0  ;;  %v1808_v19 = vsel %vm1760_vm3, %v1754_v48, 0  ;;  %v1854_v13 = vsel %vm1760_vm3, %v1755_v20, 0  ;;  %v1900_v15 = vsel %vm1760_vm3, %v1756_v22, 0  ;;  %v3703_v22 = vld [vmem:[%s4526_s19] sm:$0xff]  }
 0x573   : > { %3469 = vmatpush3.bf16.msra.mxu0 %v1762_v18  ;;  %3475 = vmatpush3.bf16.msra.mxu1 %v1808_v19 }
 0x574   : > { %3480 = vmatprep.subr.bf16.mxu0 %v4164_v4  ;;  %3486 = vmatprep.subr.bf16.mxu1 %v4164_v4 }
 0x576   : > { %3471 = vmatmul.mubr.msk.bf16.vlgmr.msra.gmra.mxu0 %vm1704_vm2, %v1749_v25  ;;  %3477 = vmatmul.mubr.msk.bf16.vlgmr.msra.gmra.mxu1 %vm1704_vm2, %v1750_v26 }
 0x577   : > { %3481 = vmatpush3.bf16.msra.mxu0 %v1854_v13  ;;  %3487 = vmatpush3.bf16.msra.mxu1 %v1900_v15 }
 0x578   : > { %3482 = vmatprep.mubr.msk.bf16.mxu0 %vm4166_vm0, %v4164_v4  ;;  %3488 = vmatprep.mubr.msk.bf16.mxu1 %vm4166_vm0, %v4164_v4 }
 0x579   : > { %3492 = vmatprep.subr.bf16.mxu0 %v4164_v4 }
 0x586   : > { %v1737_v27 = vpop.xlane.xlu0 %1736 }
 0x587   : > { %3798 = vrcp.f32 %v1737_v27 }
 0x58e   : > { %v1740_v28 = vpop.xlane.xlu1 %1739 }
 0x58f   : > { %3800 = vrcp.f32 %v1740_v28 }
 0x594   : > { %v3799_v29 = vpop.eup %3798 }
 0x595   : > { %v1747_v30 = vmul.f32 %v3799_v29, %v4730_v21  ;;  %v3697_v21 = vld [vmem:[%s4526_s19 + $0x30] sm:$0xff]  }
 0x597   : > { %v1751_v31 = vpack.c.bf16 %v1747_v30, %v1747_v30 }
 0x599   : > { %3483 = vmatmul.mubr.msk.bf16.vlgmr.msra.gmra.mxu0 %vm1704_vm2, %v1751_v31 }
 0x59a   : > { %3508 = vmatprep.mubr.msk.bf16.mxu0 %vm4166_vm0, %v4164_v4  ;;  %3493 = vmatpush3.bf16.msra.mxu0 %v3696_v35 }
 0x59b   : > { %3494 = vmatprep.subr.bf16.mxu0 %v4164_v4 }
 0x59c   : > { %v3801_v32 = vpop.eup %3800 }
 0x59d   : > { %v1748_v33 = vmul.f32 %v3801_v32, %v4734_v24  ;;  %v3700_v24 = vld [vmem:[%s4526_s19 + $0x18] sm:$0xff]  }
 0x59e   : > { %3495 = vmatpush3.bf16.msra.mxu0 %v3697_v21 }
 0x59f   : > { %v1752_v34 = vpack.c.bf16 %v1748_v33, %v1748_v33  ;;  %3496 = vmatprep.subr.bf16.mxu0 %v4164_v4 }
 0x5a1   : > { %3489 = vmatmul.mubr.msk.bf16.vlgmr.msra.gmra.mxu1 %vm1704_vm2, %v1752_v34 }
 0x5a2   : > { %2482 = vmatprep.mubr.bf16.mxu1 %v4165_v23  ;;  %3497 = vmatpush3.bf16.msra.mxu0 %v3698_v36 }
 0x5a3   : > { %3498 = vmatprep.subr.bf16.mxu0 %v4164_v4 }
 0x5a6   : > { %3499 = vmatpush3.bf16.msra.mxu0 %v3699_v37 }
 0x5a7   : > { %3500 = vmatprep.subr.bf16.mxu0 %v4164_v4 }
 0x5aa   : > { %3501 = vmatpush3.bf16.msra.mxu0 %v3700_v24 }
 0x5ab   : > { %3502 = vmatprep.subr.bf16.mxu0 %v4164_v4 }
 0x5ae   : > { %3503 = vmatpush3.bf16.msra.mxu0 %v3701_v38 }
 0x5af   : > { %3504 = vmatprep.subr.bf16.mxu0 %v4164_v4 }
 0x5b2   : > { %3505 = vmatpush3.bf16.msra.mxu0 %v3702_v11  ;;  %v3725_v11 = vld [vmem:[%s4534_s5 + $0x88] ss:$16 sps:$4 sm:$0xff]  }
 0x5b3   : > { %3506 = vmatprep.subr.bf16.mxu0 %v4164_v4 }
 0x5b6   : > { %3507 = vmatpush3.bf16.msra.mxu0 %v3703_v22  ;;  %v3742_v22 = vld [vmem:[%s4534_s5 + $0x24] ss:$16 sps:$4 sm:$0xff]  }
 0x636   : > { %v1798_v39 = vpop.f32.mrf.mxu0  ;;  %v1844_v40 = vpop.f32.mrf.mxu1 }
 0x638   : > { %v3472_v41 = vpop.f32.mrf.mxu0  ;;  %v3478_v42 = vpop.f32.mrf.mxu1 }
 0x639   : > { %v3259_v41 = vld [vmem:[%s5073_s23] ss:$0 sm:$0xff] }
 0x63a   : > { %v1801_v46 = vpop.f32.mrf.mxu0  ;;  %v1847_v47 = vpop.f32.mrf.mxu1 }
 0x63c   : > { %v3473_v49 = vpop.f32.mrf.mxu0  ;;  %v3479_v50 = vpop.f32.mrf.mxu1 }
 0x63d   : > { %v3820_v49 = vld [vmem:[%s4574_s10] sm:$0xff] }
 0x659   : > { %v1890_v52 = vpop.f32.mrf.mxu0 }
 0x65a   : > { %v1942_v56 = vcombine.low %v1798_v39, %v1890_v52  ;;  %v1943_v57 = vcombine.high %v1798_v39, %v1890_v52 }
 0x65b   : > { %v3484_v53 = vpop.f32.mrf.mxu0 }
 0x65c   : > { %v1950_v62 = vrot.slane %v1942_v56, %v4653_v3  ;;  %v1957_v63 = vrot.slane %v1943_v57, %v4653_v3  ;;  %v3709_v56 = vld [vmem:[%s4534_s5 + $0xec] ss:$16 sps:$4 sm:$0xff]   ;;  %v3712_v57 = vld [vmem:[%s4534_s5 + $0xc4] ss:$16 sps:$4 sm:$0xff]  }
 0x65d   : > { %v1893_v54 = vpop.f32.mrf.mxu0  ;;  %2491 = vmatprep.subr.bf16.mxu0 %v3709_v56  ;;  %v3768_v56 = vld [vmem:[%s4570_s24 + $0x58] sm:$0xff]  }
 0x65e   : > { %v3704_v54 = vld [vmem:[%s4534_s5 + $0xe0] ss:$16 sps:$4 sm:$0xff]  }
 0x65f   : > { %v3485_v55 = vpop.f32.mrf.mxu0 }
 0x660   : > { %v3707_v55 = vld [vmem:[%s4534_s5 + $0xe8] ss:$16 sps:$4 sm:$0xff]  }
 0x661   : > { %v1936_v58 = vpop.f32.mrf.mxu1 }
 0x662   : > { %v1958_v59 = vcombine.low %v1844_v40, %v1936_v58  ;;  %v1959_v60 = vcombine.high %v1844_v40, %v1936_v58  ;;  %v3715_v58 = vld [vmem:[%s4534_s5 + $0xcc] ss:$16 sps:$4 sm:$0xff]  }
 0x663   : > { %v3490_v61 = vpop.f32.mrf.mxu1 }
 0x664   : > { %v1966_v0 = vrot.slane %v1958_v59, %v4653_v3  ;;  %v1973_v2 = vrot.slane %v1959_v60, %v4653_v3  ;;  %v3710_v59 = vld [vmem:[%s4534_s5 + $0xc0] ss:$16 sps:$4 sm:$0xff]   ;;  %v3713_v60 = vld [vmem:[%s4534_s5 + $0xc8] ss:$16 sps:$4 sm:$0xff]  }
 0x665   : > { %v1939_v5 = vpop.f32.mrf.mxu1 }
 0x666   : > { %v1974_v6 = vcombine.low %v1950_v62, %v1966_v0  ;;  %v1975_v7 = vcombine.high %v1950_v62, %v1966_v0  ;;  %v1990_v8 = vcombine.low %v1957_v63, %v1973_v2  ;;  %v1991_v9 = vcombine.high %v1957_v63, %v1973_v2  ;;  %v3718_v2 = vld [vmem:[%s4534_s5 + $0xa4] ss:$16 sps:$4 sm:$0xff]   ;;  %v3721_v5 = vld [vmem:[%s4534_s5 + $0xac] ss:$16 sps:$4 sm:$0xff]  }
 0x667   : > { %v3491_v12 = vpop.f32.mrf.mxu1 }
 0x668   : > { %v1982_v14 = vrot.slane %v1974_v6, %v4656_v10  ;;  %v1989_v45 = vrot.slane %v1975_v7, %v4656_v10  ;;  %v1998_v48 = vrot.slane %v1990_v8, %v4656_v10  ;;  %v2005_v16 = vrot.slane %v1991_v9, %v4656_v10  ;;  %v3716_v6 = vld [vmem:[%s4534_s5 + $0xa0] ss:$16 sps:$4 sm:$0xff]   ;;  %v3719_v7 = vld [vmem:[%s4534_s5 + $0xa8] ss:$16 sps:$4 sm:$0xff]   ;;  %v3724_v9 = vld [vmem:[%s4534_s5 + $0x84] ss:$16 sps:$4 sm:$0xff]  }
 0x669   : > { %v3722_v8 = vld [vmem:[%s4534_s5 + $0x80] ss:$16 sps:$4 sm:$0xff]   ;;  %v3727_v12 = vld [vmem:[%s4534_s5 + $0x8c] ss:$16 sps:$4 sm:$0xff]  }
 0x66a   : > { %v2010_v17 = vcombine.low %v1982_v14, %v1989_v45  ;;  %v3257_v18 = vcombine.high %v1982_v14, %v1989_v45  ;;  %v2026_v19 = vcombine.low %v1998_v48, %v2005_v16  ;;  %v3258_v20 = vcombine.high %v1998_v48, %v2005_v16  ;;  %v3730_v14 = vld [vmem:[%s4534_s5 + $0x64] ss:$16 sps:$4 sm:$0xff]   ;;  %v3733_v45 = vld [vmem:[%s4534_s5 + $0x6c] ss:$16 sps:$4 sm:$0xff]   ;;  %v3728_v48 = vld [vmem:[%s4534_s5 + $0x60] ss:$16 sps:$4 sm:$0xff]  }
 0x66b   : > { %v3731_v16 = vld [vmem:[%s4534_s5 + $0x68] ss:$16 sps:$4 sm:$0xff]  }
 0x66c   : > { %v2017_v25 = vrot.slane %v2010_v17, %v4653_v3  ;;  %v2025_v26 = vrot.slane %v3257_v18, %v4653_v3  ;;  %v2033_v13 = vrot.slane %v2026_v19, %v4653_v3  ;;  %v2041_v15 = vrot.slane %v3258_v20, %v4653_v3  ;;  %v3736_v17 = vld [vmem:[%s4534_s5 + $0x44] ss:$16 sps:$4 sm:$0xff]   ;;  %v3739_v18 = vld [vmem:[%s4534_s5 + $0x4c] ss:$16 sps:$4 sm:$0xff]   ;;  %v3734_v19 = vld [vmem:[%s4534_s5 + $0x40] ss:$16 sps:$4 sm:$0xff]  }
 0x66d   : > { %v3737_v20 = vld [vmem:[%s4534_s5 + $0x48] ss:$16 sps:$4 sm:$0xff]  }
 0x66e   : > { %v2043_v27 = vcombine.high %v2017_v25, %v2025_v26  ;;  %v2059_v28 = vcombine.high %v2033_v13, %v2041_v15  ;;  %v2042_v29 = vcombine.low %v2017_v25, %v2025_v26  ;;  %v2058_v30 = vcombine.low %v2033_v13, %v2041_v15  ;;  %v3745_v25 = vld [vmem:[%s4534_s5 + $0x2c] ss:$16 sps:$4 sm:$0xff]   ;;  %v3740_v26 = vld [vmem:[%s4534_s5 + $0x20] ss:$16 sps:$4 sm:$0xff]   ;;  %v3743_v13 = vld [vmem:[%s4534_s5 + $0x28] ss:$16 sps:$4 sm:$0xff]  }
 0x66f   : > { %v3748_v15 = vld [vmem:[%s4534_s5 + $0x4] ss:$16 sps:$4 sm:$0xff]  }
 0x670   : > { %v2057_v4 = vrot.slane %v2043_v27, %v4656_v10  ;;  %v2073_v31 = vrot.slane %v2059_v28, %v4656_v10  ;;  %v2050_v32 = vrot.slane %v2042_v29, %v4656_v10  ;;  %v2066_v33 = vrot.slane %v2058_v30, %v4656_v10  ;;  %v3751_v27 = vld [vmem:[%s4534_s5 + $0xc] ss:$16 sps:$4 sm:$0xff]   ;;  %v3746_v28 = vld [vmem:[%s4534_s5] ss:$16 sps:$4 sm:$0xff]   ;;  %v3749_v29 = vld [vmem:[%s4534_s5 + $0x8] ss:$16 sps:$4 sm:$0xff]  }
 0x672   : > { %v2076_v34 = vcombine.low %v2057_v4, %v2073_v31  ;;  %v2075_v35 = vcombine.high %v2050_v32, %v2066_v33  ;;  %v2074_v21 = vcombine.low %v2050_v32, %v2066_v33  ;;  %v2077_v3 = vcombine.high %v2057_v4, %v2073_v31  ;;  %v3268_v33 = vld [vmem:[%s770_s8] ss:$0 sm:$0xff]  ;;  %s5076_s8 = sld [smem:[#allocation26_spill]] }
 0x674   : > { %2083 = vrot.lane.b32.xlu1 %v2076_v34, %s4169_s7  ;;  %2079 = vrot.lane.b32.xlu0 %v2075_v35, %s4167_s12 }
 0x678   : > { %2087 = vrot.lane.b32.xlu0 %v2077_v3, %s4168_s30  ;;  %s3340_s9 = sshll.u32 %s5076_s8, 7 }
 0x6e6   : > { %v2080_v36 = vpop.permute.xlu0 %2079  ;;  %v2084_v37 = vpop.permute.xlu1 %2083 }
 0x6e7   : > { %v2090_v24 = vsel %vm1519_vm1, %v2074_v21, %v2080_v36 }
 0x6e8   : > { %v2092_v38 = vsel %vm2091_vm4, %v2090_v24, %v2084_v37  ;;  %v3752_v37 = vld [vmem:[%s4570_s24 + $0x78] sm:$0xff]  }
 0x6e9   : > { %v3753_v24 = vld [vmem:[%s4570_s24 + $0xf8] sm:$0xff]  }
 0x6ea   : > { %v2088_v10 = vpop.permute.xlu0 %2087 }
 0x6eb   : > { %v2094_v39 = vsel %vm2093_vm5, %v2092_v38, %v2088_v10  ;;  %v3754_v10 = vld [vmem:[%s4570_s24 + $0x38] sm:$0xff]  }
 0x6ec   : > { %v2095_v40 = vpack.c.bf16 %v2094_v39, %v2094_v39  ;;  %v3755_v38 = vld [vmem:[%s4570_s24 + $0xb8] sm:$0xff]   ;;  %v3756_v39 = vld [vmem:[%s4570_s24 + $0x70] sm:$0xff]  }
 0x6ee   : > { %3509 = vmatmul.mubr.bf16.vlgmr.msra.gmra.mxu0 %v2095_v40  ;;  %v3757_v40 = vld [vmem:[%s4570_s24 + $0xf0] sm:$0xff]  }
 0x6ef   : > { %2523 = vmatprep.mubr.bf16.mxu0 %v4165_v23  ;;  %v3706_v23 = vld [vmem:[%s4534_s5 + $0xe4] ss:$16 sps:$4 sm:$0xff]   ;;  %2492 = vmatpush1.bf16.msra.mxu0 %v3707_v55  ;;  %s5075_s5 = scalar_lea.vmem [#allocation10], %s4513_s0 }
 0x6f0   : > { %2450 = vmatprep.subr.bf16.mxu1 %v3706_v23  ;;  %2493 = vmatprep.subr.bf16.mxu0 %v3715_v58  ;;  %v3269_v35 = vld [vmem:[%s5075_s5] ss:$0 sm:$0xff]  ;;  %v3766_v23 = vld [vmem:[%s4570_s24 + $0x20] sm:$0xff]   ;;  %v3770_v58 = vld [vmem:[%s4570_s24 + $0x18] sm:$0xff]  }
 0x6f1   : > { %2451 = vmatpush1.bf16.msra.mxu1 %v3704_v54  ;;  %v3765_v54 = vld [vmem:[%s4570_s24 + $0xe0] sm:$0xff]  }
 0x6f2   : > { %2452 = vmatprep.subr.bf16.mxu1 %v3712_v57  ;;  %v3767_v55 = vld [vmem:[%s4570_s24 + $0xa0] sm:$0xff]   ;;  %v3769_v57 = vld [vmem:[%s4570_s24 + $0xd8] sm:$0xff]  }
 0x6f3   : > { %2494 = vmatpush1.bf16.msra.mxu0 %v3713_v60  ;;  %v3772_v60 = vld [vmem:[%s4570_s24 + $0x50] sm:$0xff]  }
 0x6f4   : > { %2495 = vmatprep.subr.bf16.mxu0 %v3721_v5  ;;  %v3778_v5 = vld [vmem:[%s4570_s24 + $0x8] sm:$0xff]  }
 0x6f5   : > { %2453 = vmatpush1.bf16.msra.mxu1 %v3710_v59  ;;  %v3771_v59 = vld [vmem:[%s4570_s24 + $0x98] sm:$0xff]  }
 0x6f6   : > { %2454 = vmatprep.subr.bf16.mxu1 %v3718_v2  ;;  %v3777_v2 = vld [vmem:[%s4570_s24 + $0xc8] sm:$0xff]  }
 0x6f7   : > { %2496 = vmatpush1.bf16.msra.mxu0 %v3719_v7  ;;  %v3780_v7 = vld [vmem:[%s4570_s24 + $0x40] sm:$0xff]  }
 0x6f8   : > { %2497 = vmatprep.subr.bf16.mxu0 %v3727_v12  ;;  %v2268_v12 = vld [vmem:[%s4568_s6] sm:$0xf] }
 0x6f9   : > { %2455 = vmatpush1.bf16.msra.mxu1 %v3716_v6  ;;  %v3779_v6 = vld [vmem:[%s4570_s24 + $0x88] sm:$0xff]  }
 0x6fa   : > { %2456 = vmatprep.subr.bf16.mxu1 %v3724_v9  ;;  %v3782_v9 = vld [vmem:[%s4570_s24] sm:$0xff]  }
 0x6fb   : > { %2498 = vmatpush1.bf16.msra.mxu0 %v3725_v11  ;;  %v3783_v11 = vld [vmem:[%s4570_s24 + $0x80] sm:$0xff]  }
 0x6fc   : > { %2499 = vmatprep.subr.bf16.mxu0 %v3733_v45  ;;  %v2273_v45 = vrot.slane %v2268_v12, %v851_v51 }
 0x6fd   : > { %2457 = vmatpush1.bf16.msra.mxu1 %v3722_v8  ;;  %v3781_v8 = vld [vmem:[%s4570_s24 + $0xc0] sm:$0xff]  }
 0x6fe   : > { %2458 = vmatprep.subr.bf16.mxu1 %v3730_v14  ;;  %v2284_v14 = vsub.s32 3, %v4631_v43 }
 0x6ff   : > { %2500 = vmatpush1.bf16.msra.mxu0 %v3731_v16  ;;  %v2277_v16 = vrot.slane %v2268_v12, %v855_v44 }
 0x700   : > { %2501 = vmatprep.subr.bf16.mxu0 %v3739_v18 }
 0x701   : > { %2459 = vmatpush1.bf16.msra.mxu1 %v3728_v48  ;;  %v2281_v48 = vrot.slane %v2268_v12, %v859_v1 }
 0x702   : > { %2460 = vmatprep.subr.bf16.mxu1 %v3736_v17  ;;  %v2285_v17 = vrot.slane %v2268_v12, %v2284_v14 }
 0x703   : > { %2502 = vmatpush1.bf16.msra.mxu0 %v3737_v20 }
 0x704   : > { %2503 = vmatprep.subr.bf16.mxu0 %v3745_v25 }
 0x705   : > { %2461 = vmatpush1.bf16.msra.mxu1 %v3734_v19 }
 0x706   : > { %2462 = vmatprep.subr.bf16.mxu1 %v3742_v22 }
 0x707   : > { %2504 = vmatpush1.bf16.msra.mxu0 %v3743_v13 }
 0x708   : > { %2505 = vmatprep.subr.bf16.mxu0 %v3751_v27 }
 0x709   : > { %2463 = vmatpush1.bf16.msra.mxu1 %v3740_v26 }
 0x70a   : > { %2464 = vmatprep.subr.bf16.mxu1 %v3748_v15 }
 0x70b   : > { %2506 = vmatpush1.bf16.msra.mxu0 %v3749_v29 }
 0x70c   : > { %3402 = vmatprep.subr.bf16.mxu0 %v3753_v24 }
 0x70d   : > { %2465 = vmatpush1.bf16.msra.mxu1 %v3746_v28 }
 0x70e   : > { %3380 = vmatprep.subr.bf16.mxu1 %v3752_v37 }
 0x7ae   : > { %v2201_v42 = vpop.f32.mrf.mxu0 }
 0x7af   : > { %v2202_v46 = vadd.f32 %v3259_v41, %v2201_v42  ;;  %v3758_v41 = vld [vmem:[%s4570_s24 + $0x30] sm:$0xff]  }
 0x7b0   : > { %v3510_v47 = vpop.f32.mrf.mxu0  ;;  %v3759_v42 = vld [vmem:[%s4570_s24 + $0xb0] sm:$0xff]  }
 0x7b1   : > { %v4818_v50 = vadd.f32 %v3820_v49, %v2202_v46  ;;  %v3760_v46 = vld [vmem:[%s4570_s24 + $0x68] sm:$0xff]  }
 0x7b2   : > { %v2204_v52 = vpop.f32.mrf.mxu0  ;;  %v3761_v47 = vld [vmem:[%s4570_s24 + $0xe8] sm:$0xff]  }
 0x7b3   : > { %2208 = vadd.xlane.f32.xlu1 %v4818_v50  ;;  %v3762_v49 = vld [vmem:[%s4570_s24 + $0x28] sm:$0xff]  }
 0x7b4   : > { %v3511_v53 = vpop.f32.mrf.mxu0  ;;  %v3763_v52 = vld [vmem:[%s4570_s24 + $0xa8] sm:$0xff]  }
 0x7b5   : > { %v3764_v53 = vld [vmem:[%s4570_s24 + $0x60] sm:$0xff]  }
 0x83c   : > { %v2209_v61 = vpop.xlane.xlu1 %2208 }
 0x83d   : > { %v2210_v62 = vmul.f32 0.0078125, %v2209_v61  ;;  %v3773_v61 = vld [vmem:[%s4570_s24 + $0xd0] sm:$0xff]  }
 0x83f   : > { %v2211_v63 = vsub.f32 %v4818_v50, %v2210_v62  ;;  %v3774_v62 = vld [vmem:[%s4570_s24 + $0x10] sm:$0xff]  }
 0x841   : > { %v2212_v0 = vmul.f32 %v2211_v63, %v2211_v63 }
 0x843   : > { %2213 = vadd.xlane.f32.xlu0 %v2212_v0  ;;  %v3776_v0 = vld [vmem:[%s4570_s24 + $0x48] sm:$0xff]  }
 0x8cc   : > { %v2214_v30 = vpop.xlane.xlu0 %2213 }
 0x8cd   : > { %v2215_v4 = vmul.f32 0.0078125, %v2214_v30 }
 0x8cf   : > { %v2216_v31 = vadd.f32 1e-05, %v2215_v4 }
 0x8d1   : > { %3802 = vrsqrt.f32 %v2216_v31 }
 0x8de   : > { %v3803_v32 = vpop.eup %3802 }
 0x8df   : > { %v2218_v34 = vmul.f32 %v3803_v32, %v2211_v63  ;;  %v3775_v63 = vld [vmem:[%s4570_s24 + $0x90] sm:$0xff]  }
 0x8e1   : > { %v2226_v21 = vmul.f32 %v3268_v33, %v2218_v34 }
 0x8e3   : > { %v2234_v3 = vadd.f32 %v3269_v35, %v2226_v21 }
 0x8e5   : > { %v2235_v36 = vpack.c.bf16 %v2234_v3, %v2234_v3 }
 0x8e7   : > { %2483 = vmatmul.mubr.bf16.vlgmr.msra.gmra.mxu1 %v2235_v36  ;;  %2524 = vmatmul.mubr.bf16.vlgmr.msra.gmra.mxu0 %v2235_v36 }
 0x8e8   : > { %3381 = vmatpush3.bf16.msra.mxu1 %v3754_v10  ;;  %3403 = vmatpush3.bf16.msra.mxu0 %v3755_v38 }
 0x8e9   : > { %3382 = vmatprep.subr.bf16.mxu1 %v3756_v39  ;;  %3404 = vmatprep.subr.bf16.mxu0 %v3757_v40 }
 0x8ec   : > { %3383 = vmatpush3.bf16.msra.mxu1 %v3758_v41  ;;  %3405 = vmatpush3.bf16.msra.mxu0 %v3759_v42 }
 0x8ed   : > { %3384 = vmatprep.subr.bf16.mxu1 %v3760_v46  ;;  %3406 = vmatprep.subr.bf16.mxu0 %v3761_v47 }
 0x8f0   : > { %3385 = vmatpush3.bf16.msra.mxu1 %v3762_v49  ;;  %3407 = vmatpush3.bf16.msra.mxu0 %v3763_v52 }
 0x8f1   : > { %3386 = vmatprep.subr.bf16.mxu1 %v3764_v53  ;;  %3408 = vmatprep.subr.bf16.mxu0 %v3765_v54 }
 0x8f4   : > { %3387 = vmatpush3.bf16.msra.mxu1 %v3766_v23  ;;  %3409 = vmatpush3.bf16.msra.mxu0 %v3767_v55 }
 0x8f5   : > { %3388 = vmatprep.subr.bf16.mxu1 %v3768_v56  ;;  %3410 = vmatprep.subr.bf16.mxu0 %v3769_v57  ;;  %v3306_v57 = vld [vmem:[%s777_s28] ss:$0 sm:$0xff]  ;;  %s5079_s28 = sld [smem:[#allocation50_spill]] }
 0x8f8   : > { %3389 = vmatpush3.bf16.msra.mxu1 %v3770_v58  ;;  %3411 = vmatpush3.bf16.msra.mxu0 %v3771_v59 }
 0x8f9   : > { %3390 = vmatprep.subr.bf16.mxu1 %v3772_v60  ;;  %3412 = vmatprep.subr.bf16.mxu0 %v3773_v61 }
 0x8fb   : > { %s5080_s24 = smov %s5079_s28  ;;  %s2925_s20 = scalar_lea.hbm %s5079_s28, %s3340_s9 }
 0x8fc   : > { %3391 = vmatpush3.bf16.msra.mxu1 %v3774_v62  ;;  %3413 = vmatpush3.bf16.msra.mxu0 %v3775_v63 }
 0x8fd   : > { %3392 = vmatprep.subr.bf16.mxu1 %v3776_v0  ;;  %3414 = vmatprep.subr.bf16.mxu0 %v3777_v2 }
 0x900   : > { %3393 = vmatpush3.bf16.msra.mxu1 %v3778_v5  ;;  %3415 = vmatpush3.bf16.msra.mxu0 %v3779_v6 }
 0x901   : > { %3394 = vmatprep.subr.bf16.mxu1 %v3780_v7  ;;  %3416 = vmatprep.subr.bf16.mxu0 %v3781_v8 }
 0x904   : > { %3395 = vmatpush3.bf16.msra.mxu1 %v3782_v9  ;;  %3417 = vmatpush3.bf16.msra.mxu0 %v3783_v11 }
 0x9a7   : > { %v2484_v18 = vpop.f32.mrf.mxu1  ;;  %v2525_v19 = vpop.f32.mrf.mxu0 }
 0x9a8   : > { %v2485_v20 = vadd.f32 %v2484_v18, %v2273_v45  ;;  %v2526_v22 = vadd.f32 %v2525_v19, %v2281_v48 }
 0x9a9   : > { %v2486_v25 = vpop.f32.mrf.mxu1  ;;  %v2527_v26 = vpop.f32.mrf.mxu0 }
 0x9aa   : > { %v3302_v13 = vmul.f32 -1.702, %v2485_v20  ;;  %v3304_v15 = vmul.f32 -1.702, %v2526_v22  ;;  %v2487_v27 = vadd.f32 %v2486_v25, %v2277_v16  ;;  %v2528_v28 = vadd.f32 %v2527_v26, %v2285_v17 }
 0x9ab   : > { %v2488_v29 = vpop.f32.mrf.mxu1  ;;  %v2529_v30 = vpop.f32.mrf.mxu0 }
 0x9ac   : > { %v2540_v51 = vmul.f32 1.442695, %v3302_v13  ;;  %v2544_v4 = vmul.f32 1.442695, %v3304_v15  ;;  %v3303_v31 = vmul.f32 -1.702, %v2487_v27 }
 0x9ad   : > { %v3305_v1 = vmul.f32 -1.702, %v2528_v28  ;;  %v2489_v32 = vpop.f32.mrf.mxu1  ;;  %v2530_v43 = vpop.f32.mrf.mxu0 }
 0x9ae   : > { %3804 = vpow2.f32 %v2540_v51  ;;  %v2542_v44 = vmul.f32 1.442695, %v3303_v31 }
 0x9af   : > { %3806 = vpow2.f32 %v2544_v4  ;;  %v2546_v33 = vmul.f32 1.442695, %v3305_v1 }
 0x9b0   : > { %3808 = vpow2.f32 %v2542_v44 }
 0x9b1   : > { %3810 = vpow2.f32 %v2546_v33 }
 0x9bb   : > { %v3805_v34 = vpop.eup %3804 }
 0x9bc   : > { %v3807_v35 = vpop.eup %3806  ;;  %v2548_v21 = vadd.f32 1.0, %v3805_v34 }
 0x9bd   : > { %v3809_v3 = vpop.eup %3808  ;;  %v2550_v36 = vadd.f32 1.0, %v3807_v35 }
 0x9be   : > { %v3811_v37 = vpop.eup %3810  ;;  %3812 = vrcp.f32 %v2548_v21  ;;  %v2549_v24 = vadd.f32 1.0, %v3809_v3 }
 0x9bf   : > { %3814 = vrcp.f32 %v2550_v36  ;;  %v2551_v10 = vadd.f32 1.0, %v3811_v37 }
 0x9c0   : > { %3816 = vrcp.f32 %v2549_v24 }
 0x9c1   : > { %3818 = vrcp.f32 %v2551_v10 }
 0x9cb   : > { %v3813_v38 = vpop.eup %3812 }
 0x9cc   : > { %v3815_v39 = vpop.eup %3814  ;;  %v2560_v41 = vmul.f32 %v3813_v38, %v2485_v20 }
 0x9cd   : > { %v3817_v40 = vpop.eup %3816  ;;  %v2562_v46 = vmul.f32 %v3815_v39, %v2526_v22 }
 0x9ce   : > { %v3819_v42 = vpop.eup %3818  ;;  %v2561_v47 = vmul.f32 %v3817_v40, %v2487_v27  ;;  %v2564_v53 = vpack.c.bf16 %v2560_v41, %v2560_v41 }
 0x9cf   : > { %v2563_v49 = vmul.f32 %v3819_v42, %v2528_v28  ;;  %v2566_v23 = vpack.c.bf16 %v2562_v46, %v2562_v46 }
 0x9d0   : > { %v2565_v52 = vpack.c.bf16 %v2561_v47, %v2561_v47 }
 0x9d1   : > { %v2567_v54 = vpack.c.bf16 %v2563_v49, %v2563_v49 }
 0x9d2   : > { %2863 = vmatprep.mubr.bf16.mxu1 %v2565_v52 }
 0x9d3   : > { %2903 = vmatprep.mubr.bf16.mxu0 %v2567_v54  ;;  %2864 = vmatmul.mubr.bf16.vlgmr.msra.gmra.mxu1 %v2564_v53 }
 0x9d4   : > { %2904 = vmatmul.mubr.bf16.vlgmr.msra.gmra.mxu0 %v2566_v23 }
 0xa93   : > { %v3396_v55 = vpop.f32.mrf.mxu1 }
 0xa94   : > { %v3418_v56 = vpop.f32.mrf.mxu0 }
 0xa95   : > { %v3397_v58 = vpop.f32.mrf.mxu1 }
 0xa96   : > { %v3398_v59 = vadd.f32 %v3397_v58, %v3396_v55  ;;  %v3419_v60 = vpop.f32.mrf.mxu0 }
 0xa97   : > { %v3399_v61 = vpop.f32.mrf.mxu1  ;;  %v3420_v63 = vadd.f32 %v3419_v60, %v3418_v56 }
 0xa98   : > { %v2866_v62 = vadd.f32 %v3398_v59, %v3306_v57  ;;  %v3421_v0 = vpop.f32.mrf.mxu0 }
 0xa99   : > { %v3400_v2 = vpop.f32.mrf.mxu1 }
 0xa9a   : > { %v2906_v5 = vadd.f32 %v3420_v63, %v2866_v62  ;;  %v3422_v6 = vpop.f32.mrf.mxu0 }
 0xa9c   : > { %v2911_v7 = vadd.f32 %v2906_v5, %v4818_v50 }
 0xa9e   : > { %2912 = vst [vmem:[%s4574_s10] sm:$0xff] %v2911_v7 }
 0xa9f   : > { %4030 = shalt.err (!%p4027_p7)
}
 0xaa0   : > { %s4031_s4 = scalar_lea.hbm %s2925_s20, 128  ;;  %s4035_s12 = scalar_lea.hbm %s5080_s24, 256 }
 0xaa1   : > { %p4032_p13 = scmp.ne.s32.totalorder %s2925_s20, %s4031_s4  ;;  %p4036_p6 = scmp.lt.s32.totalorder %s2925_s20, %s5080_s24 }
 0xaa2   : > { %p4037_p4 = scmp.lt.s32.totalorder %s4035_s12, %s4031_s4 }
 0xaa3   : > { %p4033_p0 = pnand %p4032_p13, %p4432_p8 }
 0xaa4   : > { %p4038_p2 = por %p4037_p4, %p4036_p6 }
 0xaa5   : > { %p4034_p10 = pneg %p4033_p0 }
 0xaa7   : > { %p4039_p3 = pnand %p4038_p2, %p4034_p10 }
 0xaa9   : > { %4042 = shalt.err (!%p4039_p3)
}
 0xaaa   : > { %3532 = dma.vmem_to_hbm [thread:$0]  (%p4432_p8), %s2928_s22, 128, %s2925_s20, %s2914_s29  }
 0xaab PF: > { %s5081_s19 = sld [smem:[#allocation29_spill]] }
 0xaac   : > { %s5082_s2 = sld [smem:[#allocation22_spill]] }
 0xaad   : > { %s5083_s26 = sld [smem:[#allocation36_spill]] }
 0xab1   : > { %p3561_p9 = scmp.ge.s32.totalorder %s5081_s19, 2 }
 0xab2   : > { %s2939_s23 = sand.u32 1, %s5082_s2  }
 0xab3   : > { %p5084_p11 = scmp.ne.s32.totalorder %s5083_s26, 0  ;;  %s2940_s11 = scalar_lea.sflag [#allocation4], %s2939_s23 }
 0xab5   : > { %p3557_p12 = pnand %p3561_p9, %p5084_p11 }
 0xab7   : > { %p3558_p5 = pneg %p3557_p12 }
 0xab9   : > { %4104 = dma.done.wait (%p3558_p5), %s2940_s11, 128  }
 0xaba   : > { %4106 = vsyncadd (%p3558_p5), %s2940_s11, 4294967168  ;;  %s38_s18 = sadd.s32 1, %s5081_s19   ;;  %s5085_s25 = sld [smem:[#allocation20_spill]] }
 0xabb   : > { %p35_p1 = scmp.ge.s32.totalorder %s38_s18, 6   ;;  %s5086_s26 = sld [smem:[#allocation21_spill]] }
 0xabc   : > { %s5087_s27 = sld [smem:[#allocation33_spill]] }
 0xabd   : > { %s5088_s28 = sld [smem:[#allocation23_spill]] }
 0xabe   : > { %s5089_s29 = sld [smem:[#allocation24_spill]] }
 0xabf   : > { %s5090_s30 = sld [smem:[#allocation34_spill]]  ;;  %37 = sbr.rel (!%p35_p1) target bundleno = 30 (0x1e), region = 211 }
 0xac0   : > { %s5091_s14 = sld [smem:[#allocation27_spill]] }
 0xac1   : > { %s5092_s15 = sld [smem:[#allocation28_spill]] }
 0xac2   : > { %s5093_s16 = sld [smem:[#allocation31_spill]] }
 0xac3   : > { %s5094_s17 = sld [smem:[#allocation32_spill]] }
 0xac4   :  { %2945 = vsyncpa [#allocation3], 1 }
 0xac5   :  { %2947 = vsyncpa [#allocation3 + $0x1], 1 }
 0xac6   :  { %2948 = vsyncpa [#allocation6], 1 }
 0xac7   :  { %2950 = vsyncpa [#allocation6 + $0x1], 1 }
 0xac8   :  { %2951 = vsyncpa [#allocation9], 1 }
 0xac9   :  { %2953 = vsyncpa [#allocation9 + $0x1], 1 }
 0xaca   :  { %2954 = vsyncpa [#allocation12], 1 }
 0xacb   :  { %2956 = vsyncpa [#allocation12 + $0x1], 1 }
 0xacc   :  { %2957 = vsyncpa [#allocation4], 1 }
 0xacd   :  { %2959 = vsyncpa [#allocation4 + $0x1], 1 }

</bundles_post_ra>
